<compile_context>
chip_gen: v7x
topology: tpu7x:2x2x1
jax: 0.10.0
libtpu: 0.0.40
codegen_flags: <defaults>
</compile_context>

<pallas_src>
import numpy as np

import jax
import jax.numpy as jnp
from jax import lax
from jax.experimental import pallas as pl
from jax.experimental.pallas import tpu as pltpu


# ----------------------------------------------------------------------------
# Model hyper-parameters (stand-in MaxViT encoder/decoder -- see TODO above).
# ----------------------------------------------------------------------------
IN_CH = 4
IMG = 16
C1 = 8                                   # stage-1 channels
C2 = 16                                  # encoder_out_chs
ENC_SIZE = IMG // 4                      # encoder_out_size (reduction = 4) -> 4
LATENT_FROM_ENC = C2 * ENC_SIZE * ENC_SIZE        # 256
LATENT_DIM = min(32, LATENT_FROM_ENC)             # min(latent_dim, from_encoder)

COUT_PAD = 8                             # pad recon channels 4 -> 8 (16*8 = 128 lanes)
ZPAD = 128                               # pad latent 32 -> 128      (lane-dense z)
HWC = ENC_SIZE * C2                      # 64: lanes of the 4x4x16 feature map
TAPK = 64                                # per-tap contraction width (w_in*c_in), all convs
CATK = 3 * TAPK                          # tap-concatenated contraction width (192)

MXU_DTYPE = jnp.bfloat16                 # matmul operand dtype (f32 accumulate)


# ----------------------------------------------------------------------------
# Exact (erf) GELU -- matches PyTorch nn.GELU() default.  erf uses the
# Abramowitz & Stegun 7.1.26 polynomial; the reciprocal goes to the EUP.
# ----------------------------------------------------------------------------
_SQRT1_2 = 0.7071067811865476


def _erf_approx(x):
    ax = jnp.abs(x)
    t = pl.reciprocal(1.0 + 0.3275911 * ax, approx=True)
    poly = ((((1.061405429 * t - 1.453152027) * t + 1.421413741) * t
             - 0.284496736) * t + 0.254829592) * t
    y = 1.0 - poly * jnp.exp(-ax * ax)
    return jnp.where(x < 0, -y, y)


def _gelu(x):
    return 0.5 * x * (1.0 + _erf_approx(x * _SQRT1_2))


# ----------------------------------------------------------------------------
# Fused kernel.  Per-sample feature-map layout: rows = h, lanes = w*C + c.
# A 3x3 conv (optionally with a folded 2x nearest upsample) is evaluated as
#     RX  = R_cat @ X                (one dot; tap-major rows, 3*Ho x 64)
#     CAT = lane-concat of the 3 tap row-blocks  (VMEM scratch, static slices)
#     Y   = CAT @ M_cat + bias       (one deep-K dot, K = 192)
# ----------------------------------------------------------------------------
def _fused_ae_kernel(x_ref,
                     r1_ref, m1_ref, b1_ref,
                     r2_ref, m2_ref, b2_ref,
                     wfe_ref, bfe_ref, wfd_ref, bd0_ref,
                     rd1_ref, md1_ref, bd1_ref,
                     rd2_ref, md2_ref, bd2_ref,
                     xrec_ref, z_ref,
                     cat_ref, row_ref, d0_ref):

    def mx(a, b):
        return jnp.dot(a, b, preferred_element_type=jnp.float32)

    def conv(x_bf, r_ref, m_ref, b_ref, h_out):
        # 1) one row-selection dot covering all 3 vertical taps (tap-major rows)
        rx = mx(r_ref[...], x_bf).astype(MXU_DTYPE)            # [3*h_out, 64]
        # 2) lane-concat the taps into [h_out, 192] (static slices, VMEM scratch)
        for di in range(3):
            cat_ref[0:h_out, di * TAPK:(di + 1) * TAPK] = (
                rx[di * h_out:(di + 1) * h_out, :])
        # 3) one deep-K channel/horizontal-mix dot
        return mx(cat_ref[0:h_out, :], m_ref[...]) + b_ref[...]

    # ---- encoder ----
    x0 = x_ref[0].astype(MXU_DTYPE)                            # [16, 64]
    h1 = _gelu(conv(x0, r1_ref, m1_ref, b1_ref, 8)).astype(MXU_DTYPE)     # [8, 64]
    h2 = _gelu(conv(h1, r2_ref, m2_ref, b2_ref, ENC_SIZE))                # [4, 64] f32

    # ---- fc_encode: flatten (NCHW order folded into wfe) + single K=256 dot ----
    for h in range(ENC_SIZE):
        row_ref[0:1, h * HWC:(h + 1) * HWC] = h2[h:h + 1, :]
    feat = row_ref[0:1, :].astype(MXU_DTYPE)                   # [1, 256]
    z = mx(feat, wfe_ref[...]) + bfe_ref[...]                  # [1, 128] (32 valid)
    z_ref[0] = z.astype(z_ref.dtype)

    # ---- fc_decode: single dot + unflatten (view(-1,C,4,4) folded into wfd/bd0) ----
    d0row = mx(z.astype(MXU_DTYPE), wfd_ref[...])              # [1, 256]
    for h in range(ENC_SIZE):
        d0_ref[h:h + 1, :] = d0row[:, h * HWC:(h + 1) * HWC]
    d0 = (d0_ref[0:ENC_SIZE, :] + bd0_ref[...]).astype(MXU_DTYPE)         # [4, 64]

    # ---- decoder (2x nearest upsample folded into each conv) ----
    g1 = _gelu(conv(d0, rd1_ref, md1_ref, bd1_ref, 8)).astype(MXU_DTYPE)  # [8, 64]
    g2 = conv(g1, rd2_ref, md2_ref, bd2_ref, IMG)                         # [16, 128]
    xrec_ref[0] = g2.astype(xrec_ref.dtype)


# ----------------------------------------------------------------------------
# One-time weight re-layout (pure weight preprocessing, batch-independent).
# ----------------------------------------------------------------------------
def _conv_operands(w_hwio, h_in, w_in, h_out, w_out, stride, pad, upsample):
    """Tap-major row-selection R [3*Ho, Hin] and channel/horizontal-mix
    M [3*Win*Cin, Wout*Cout] such that conv(X) = concat_taps(R@X) @ M."""
    w = np.asarray(w_hwio, np.float32)                  # [3, 3, cin, cout]
    cin, cout = w.shape[2], w.shape[3]

    R = np.zeros((3 * h_out, h_in), np.float32)
    for di in range(3):
        for oh in range(h_out):
            h = oh * stride + di - pad
            if upsample:
                if 0 <= h < 2 * h_in:
                    R[di * h_out + oh, h // 2] = 1.0
            else:
                if 0 <= h < h_in:
                    R[di * h_out + oh, h] = 1.0

    K = w_in * cin
    M = np.zeros((3 * K, w_out * cout), np.float32)
    for di in range(3):
        for wo in range(w_out):
            for dj in range(3):
                ww = wo * stride + dj - pad
                if upsample:
                    if not (0 <= ww < 2 * w_in):
                        continue
                    wi = ww // 2
                else:
                    if not (0 <= ww < w_in):
                        continue
                    wi = ww
                M[di * K + wi * cin: di * K + wi * cin + cin,
                  wo * cout: wo * cout + cout] += w[di, dj]
    return jnp.asarray(R), jnp.asarray(M)


def prepare_operands(params):
    """Re-layout the module weights into the fused kernel's operands (run once)."""
    bf = lambda a: jnp.asarray(a, jnp.bfloat16)
    f32 = lambda a: jnp.asarray(a, jnp.float32)

    # encoder conv 1: 16x16x4 -> 8x8x8, 3x3 s2 p1
    r1, m1 = _conv_operands(params["enc1_w"], IMG, IMG, 8, 8, 2, 1, False)
    b1 = jnp.tile(params["enc1_b"], 8).reshape(1, 8 * C1)

    # encoder conv 2: 8x8x8 -> 4x4x16, 3x3 s2 p1
    r2, m2 = _conv_operands(params["enc2_w"], 8, 8, ENC_SIZE, ENC_SIZE, 2, 1, False)
    b2 = jnp.tile(params["enc2_b"], ENC_SIZE).reshape(1, HWC)

    # fc_encode (nn.Flatten on NCHW -> (C,H,W) order folded into the weight)
    wfe = jnp.pad(params["fc_enc_w"], ((0, 0), (0, ZPAD - LATENT_DIM)))
    wfe = jnp.transpose(wfe.reshape(C2, ENC_SIZE, ENC_SIZE, ZPAD), (1, 2, 0, 3))
    wfe = wfe.reshape(LATENT_FROM_ENC, ZPAD)
    bfe = jnp.pad(params["fc_enc_b"], (0, ZPAD - LATENT_DIM)).reshape(1, ZPAD)

    # fc_decode (view(-1, C2, 4, 4) -> NHWC order folded into weight / bias)
    wfd = jnp.pad(params["fc_dec_w"], ((0, ZPAD - LATENT_DIM), (0, 0)))
    wfd = jnp.transpose(wfd.reshape(ZPAD, C2, ENC_SIZE, ENC_SIZE), (0, 2, 3, 1))
    wfd = wfd.reshape(ZPAD, LATENT_FROM_ENC)
    bd0 = jnp.transpose(params["fc_dec_b"].reshape(C2, ENC_SIZE, ENC_SIZE), (1, 2, 0))
    bd0 = bd0.reshape(ENC_SIZE, HWC)

    # decoder conv 1 (2x nearest upsample folded): 4x4x16 -> 8x8x8
    rd1, md1 = _conv_operands(params["dec1_w"], ENC_SIZE, ENC_SIZE, 8, 8, 1, 1, True)
    bd1 = jnp.tile(params["dec1_b"], 8).reshape(1, 8 * C1)

    # decoder conv 2 (2x nearest upsample folded): 8x8x8 -> 16x16x(4->8 padded)
    wd2 = jnp.pad(params["dec2_w"], ((0, 0), (0, 0), (0, 0), (0, COUT_PAD - IN_CH)))
    rd2, md2 = _conv_operands(wd2, 8, 8, IMG, IMG, 1, 1, True)
    bd2 = jnp.tile(jnp.pad(params["dec2_b"], (0, COUT_PAD - IN_CH)),
                   IMG).reshape(1, IMG * COUT_PAD)

    assert m1.shape[0] == m2.shape[0] == md1.shape[0] == md2.shape[0] == CATK

    return (bf(r1), bf(m1), f32(b1), bf(r2), bf(m2), f32(b2),
            bf(wfe), f32(bfe), bf(wfd), f32(bd0),
            bf(rd1), bf(md1), f32(bd1), bf(rd2), bf(md2), f32(bd2))


# ----------------------------------------------------------------------------
# Public forward: NCHW in -> (x_recon NCHW, z) out, one pallas_call inside.
# ----------------------------------------------------------------------------
def maxvit_ae_forward(operands, x_nchw):
    B = x_nchw.shape[0]
    # NCHW -> per-sample [H, W*C] slab (lanes = w*C + c).
    x_slab = jnp.transpose(x_nchw, (0, 2, 3, 1)).reshape(B, IMG, IMG * IN_CH)
    x_slab = x_slab.astype(jnp.float32)

    def const2(a):
        return pl.BlockSpec(a.shape, lambda b: (0, 0))

    in_specs = [pl.BlockSpec((1, IMG, IMG * IN_CH), lambda b: (b, 0, 0))]
    in_specs += [const2(a) for a in operands]

    out_shape = (jax.ShapeDtypeStruct((B, IMG, IMG * COUT_PAD), jnp.float32),
                 jax.ShapeDtypeStruct((B, 1, ZPAD), jnp.float32))
    out_specs = (pl.BlockSpec((1, IMG, IMG * COUT_PAD), lambda b: (b, 0, 0)),
                 pl.BlockSpec((1, 1, ZPAD), lambda b: (b, 0, 0)))

    xrec_slab, z_pad = pl.pallas_call(
        _fused_ae_kernel,
        out_shape=out_shape,
        grid=(B,),
        in_specs=in_specs,
        out_specs=out_specs,
        scratch_shapes=[
            pltpu.VMEM((IMG, CATK), MXU_DTYPE),          # conv tap lane-concat
            pltpu.VMEM((8, LATENT_FROM_ENC), jnp.float32),   # fc_encode flatten row
            pltpu.VMEM((8, HWC), jnp.float32),           # fc_decode un-flatten
        ],
        compiler_params=pltpu.CompilerParams(
            dimension_semantics=("parallel",)),
    )(x_slab, *operands)

    x_recon = xrec_slab.reshape(B, IMG, IMG, COUT_PAD)[..., :IN_CH]
    x_recon = jnp.transpose(x_recon, (0, 3, 1, 2))       # NHWC -> NCHW
    z = z_pad[:, 0, :LATENT_DIM]
    return x_recon, z


# ----------------------------------------------------------------------------
# Deterministic parameters + pure-JAX float32 reference (for validation).
# ----------------------------------------------------------------------------
def init_params(seed=42):
    key = jax.random.PRNGKey(seed)
    ks = jax.random.split(key, 12)

    def w(k, shape, fan_in):
        return jax.random.normal(k, shape, jnp.float32) / jnp.sqrt(fan_in)

    def b(k, n):
        return 0.1 * jax.random.normal(k, (n,), jnp.float32)

    return dict(
        enc1_w=w(ks[0], (3, 3, IN_CH, C1), 3 * 3 * IN_CH), enc1_b=b(ks[6], C1),
        enc2_w=w(ks[1], (3, 3, C1, C2), 3 * 3 * C1),       enc2_b=b(ks[7], C2),
        fc_enc_w=w(ks[2], (LATENT_FROM_ENC, LATENT_DIM), LATENT_FROM_ENC),
        fc_enc_b=b(ks[8], LATENT_DIM),
        fc_dec_w=w(ks[3], (LATENT_DIM, LATENT_FROM_ENC), LATENT_DIM),
        fc_dec_b=b(ks[9], LATENT_FROM_ENC),
        dec1_w=w(ks[4], (3, 3, C2, C1), 3 * 3 * C2),       dec1_b=b(ks[10], C1),
        dec2_w=w(ks[5], (3, 3, C1, IN_CH), 3 * 3 * C1),    dec2_b=b(ks[11], IN_CH),
    )


def _reference_forward(params, x_nchw):
    """Pure-JAX (XLA) float32 reference of the same forward pass."""
    B = x_nchw.shape[0]
    x = jnp.transpose(x_nchw, (0, 2, 3, 1))

    def conv(h, w, b, stride):
        y = lax.conv_general_dilated(h, w, (stride, stride), ((1, 1), (1, 1)),
                                     dimension_numbers=("NHWC", "HWIO", "NHWC"))
        return y + b

    gelu = lambda v: jax.nn.gelu(v, approximate=False)

    h = gelu(conv(x, params["enc1_w"], params["enc1_b"], 2))
    h = gelu(conv(h, params["enc2_w"], params["enc2_b"], 2))
    feat = jnp.transpose(h, (0, 3, 1, 2)).reshape(B, LATENT_FROM_ENC)   # nn.Flatten
    z = feat @ params["fc_enc_w"] + params["fc_enc_b"]

    d = z @ params["fc_dec_w"] + params["fc_dec_b"]
    d = jnp.transpose(d.reshape(B, C2, ENC_SIZE, ENC_SIZE), (0, 2, 3, 1))
    d = jnp.repeat(jnp.repeat(d, 2, axis=1), 2, axis=2)
    d = gelu(conv(d, params["dec1_w"], params["dec1_b"], 1))
    d = jnp.repeat(jnp.repeat(d, 2, axis=1), 2, axis=2)
    d = conv(d, params["dec2_w"], params["dec2_b"], 1)
    return jnp.transpose(d, (0, 3, 1, 2)), z


if __name__ == "__main__":
    key = jax.random.PRNGKey(0)
    x = jax.random.normal(key, (2, IN_CH, IMG, IMG), jnp.float32)

    params = init_params()
    operands = prepare_operands(params)                 # one-time weight prep

    fwd = jax.jit(maxvit_ae_forward)
    x_recon, z = fwd(operands, x)
    jax.block_until_ready((x_recon, z))

    assert x_recon.shape == (2, IN_CH, IMG, IMG), x_recon.shape
    assert z.shape == (2, LATENT_DIM), z.shape
    assert x_recon.dtype == jnp.float32 and z.dtype == jnp.float32
    assert bool(jnp.all(jnp.isfinite(x_recon))) and bool(jnp.all(jnp.isfinite(z)))

    # Validate against the pure-JAX float32 reference (loose tolerance because
    # the kernel's matmuls use bf16 operands with f32 accumulation).
    xr_ref, z_ref_out = jax.jit(_reference_forward)(params, x)
    np.testing.assert_allclose(np.asarray(z), np.asarray(z_ref_out),
                               rtol=5e-2, atol=5e-2)
    np.testing.assert_allclose(np.asarray(x_recon), np.asarray(xr_ref),
                               rtol=5e-2, atol=5e-2)

    print("KERNEL_OK")
</pallas_src>

<mosaic_0001>
module attributes {stable_mosaic.version = 11 : i64} {
  func.func @_fused_ae_kernel(%arg0: i32, %arg1: memref<1x16x64xf32, #tpu.memory_space<vmem>>, %arg2: memref<24x16xbf16, #tpu.memory_space<vmem>>, %arg3: memref<192x64xbf16, #tpu.memory_space<vmem>>, %arg4: memref<1x64xf32, #tpu.memory_space<vmem>>, %arg5: memref<12x8xbf16, #tpu.memory_space<vmem>>, %arg6: memref<192x64xbf16, #tpu.memory_space<vmem>>, %arg7: memref<1x64xf32, #tpu.memory_space<vmem>>, %arg8: memref<256x128xbf16, #tpu.memory_space<vmem>>, %arg9: memref<1x128xf32, #tpu.memory_space<vmem>>, %arg10: memref<128x256xbf16, #tpu.memory_space<vmem>>, %arg11: memref<4x64xf32, #tpu.memory_space<vmem>>, %arg12: memref<24x4xbf16, #tpu.memory_space<vmem>>, %arg13: memref<192x64xbf16, #tpu.memory_space<vmem>>, %arg14: memref<1x64xf32, #tpu.memory_space<vmem>>, %arg15: memref<48x8xbf16, #tpu.memory_space<vmem>>, %arg16: memref<192x128xbf16, #tpu.memory_space<vmem>>, %arg17: memref<1x128xf32, #tpu.memory_space<vmem>>, %arg18: memref<1x16x128xf32, #tpu.memory_space<vmem>>, %arg19: memref<1x1x128xf32, #tpu.memory_space<vmem>>, %arg20: memref<16x192xbf16, #tpu.memory_space<vmem>>, %arg21: memref<8x256xf32, #tpu.memory_space<vmem>>, %arg22: memref<8x64xf32, #tpu.memory_space<vmem>>) attributes {dimension_semantics = [#tpu.dimension_semantics<parallel>], iteration_bounds = array<i64: 2>, scalar_prefetch = 0 : i64, scratch_operands = 3 : i64, tpu.core_type = #tpu.core_type<tc>, window_params = [{transform_indices = @transform_0, window_bounds = array<i64: 1, 16, 64>}, {pipeline_mode = #tpu.pipeline_mode<synchronous>, transform_indices = @transform_1, window_bounds = array<i64: 24, 16>}, {pipeline_mode = #tpu.pipeline_mode<synchronous>, transform_indices = @transform_2, window_bounds = array<i64: 192, 64>}, {pipeline_mode = #tpu.pipeline_mode<synchronous>, transform_indices = @transform_3, window_bounds = array<i64: 1, 64>}, {pipeline_mode = #tpu.pipeline_mode<synchronous>, transform_indices = @transform_4, window_bounds = array<i64: 12, 8>}, {pipeline_mode = #tpu.pipeline_mode<synchronous>, transform_indices = @transform_5, window_bounds = array<i64: 192, 64>}, {pipeline_mode = #tpu.pipeline_mode<synchronous>, transform_indices = @transform_6, window_bounds = array<i64: 1, 64>}, {pipeline_mode = #tpu.pipeline_mode<synchronous>, transform_indices = @transform_7, window_bounds = array<i64: 256, 128>}, {pipeline_mode = #tpu.pipeline_mode<synchronous>, transform_indices = @transform_8, window_bounds = array<i64: 1, 128>}, {pipeline_mode = #tpu.pipeline_mode<synchronous>, transform_indices = @transform_9, window_bounds = array<i64: 128, 256>}, {pipeline_mode = #tpu.pipeline_mode<synchronous>, transform_indices = @transform_10, window_bounds = array<i64: 4, 64>}, {pipeline_mode = #tpu.pipeline_mode<synchronous>, transform_indices = @transform_11, window_bounds = array<i64: 24, 4>}, {pipeline_mode = #tpu.pipeline_mode<synchronous>, transform_indices = @transform_12, window_bounds = array<i64: 192, 64>}, {pipeline_mode = #tpu.pipeline_mode<synchronous>, transform_indices = @transform_13, window_bounds = array<i64: 1, 64>}, {pipeline_mode = #tpu.pipeline_mode<synchronous>, transform_indices = @transform_14, window_bounds = array<i64: 48, 8>}, {pipeline_mode = #tpu.pipeline_mode<synchronous>, transform_indices = @transform_15, window_bounds = array<i64: 192, 128>}, {pipeline_mode = #tpu.pipeline_mode<synchronous>, transform_indices = @transform_16, window_bounds = array<i64: 1, 128>}, {transform_indices = @transform_17, window_bounds = array<i64: 1, 16, 128>}, {transform_indices = @transform_18, window_bounds = array<i64: 1, 1, 128>}]} {
    %c0 = arith.constant 0 : index
    %c0_0 = arith.constant 0 : index
    %c0_1 = arith.constant 0 : index
    %0 = vector.load %arg1[%c0, %c0_0, %c0_1] : memref<1x16x64xf32, #tpu.memory_space<vmem>>, vector<1x16x64xf32>
    %1 = vector.shape_cast %0 : vector<1x16x64xf32> to vector<16x64xf32>
    %2 = arith.truncf %1 : vector<16x64xf32> to vector<16x64xbf16>
    %c0_2 = arith.constant 0 : index
    %c0_3 = arith.constant 0 : index
    %3 = vector.load %arg2[%c0_2, %c0_3] : memref<24x16xbf16, #tpu.memory_space<vmem>>, vector<24x16xbf16>
    %cst = arith.constant dense<0.000000e+00> : vector<24x64xf32>
    %4 = tpu.matmul %3, %2, %cst {dimension_numbers = #tpu.dot_dimension_numbers<[1], [0], [0], [1], [0, 0, 1, 1], [], []>} : vector<24x16xbf16>, vector<16x64xbf16>, vector<24x64xf32> -> vector<24x64xf32>
    %5 = arith.truncf %4 : vector<24x64xf32> to vector<24x64xbf16>
    %6 = vector.extract_strided_slice %5 {offsets = [0, 0], sizes = [8, 64], strides = [1, 1]} : vector<24x64xbf16> to vector<8x64xbf16>
    %c0_4 = arith.constant 0 : index
    %c0_5 = arith.constant 0 : index
    %7 = vector.load %arg20[%c0_4, %c0_5] : memref<16x192xbf16, #tpu.memory_space<vmem>>, vector<8x64xbf16>
    tpu.vector_store %arg20[%c0_4, %c0_5], %6 {strides = array<i32>} : memref<16x192xbf16, #tpu.memory_space<vmem>>, vector<8x64xbf16>,
    %8 = vector.extract_strided_slice %5 {offsets = [8, 0], sizes = [8, 64], strides = [1, 1]} : vector<24x64xbf16> to vector<8x64xbf16>
    %c0_6 = arith.constant 0 : index
    %c64 = arith.constant 64 : index
    %9 = vector.load %arg20[%c0_6, %c64] : memref<16x192xbf16, #tpu.memory_space<vmem>>, vector<8x64xbf16>
    tpu.vector_store %arg20[%c0_6, %c64], %8 {strides = array<i32>} : memref<16x192xbf16, #tpu.memory_space<vmem>>, vector<8x64xbf16>,
    %10 = vector.extract_strided_slice %5 {offsets = [16, 0], sizes = [8, 64], strides = [1, 1]} : vector<24x64xbf16> to vector<8x64xbf16>
    %c0_7 = arith.constant 0 : index
    %c128 = arith.constant 128 : index
    %11 = vector.load %arg20[%c0_7, %c128] : memref<16x192xbf16, #tpu.memory_space<vmem>>, vector<8x64xbf16>
    tpu.vector_store %arg20[%c0_7, %c128], %10 {strides = array<i32>} : memref<16x192xbf16, #tpu.memory_space<vmem>>, vector<8x64xbf16>,
    %c0_8 = arith.constant 0 : index
    %c0_9 = arith.constant 0 : index
    %12 = vector.load %arg20[%c0_8, %c0_9] : memref<16x192xbf16, #tpu.memory_space<vmem>>, vector<8x192xbf16>
    %c0_10 = arith.constant 0 : index
    %c0_11 = arith.constant 0 : index
    %13 = vector.load %arg3[%c0_10, %c0_11] : memref<192x64xbf16, #tpu.memory_space<vmem>>, vector<192x64xbf16>
    %cst_12 = arith.constant dense<0.000000e+00> : vector<8x64xf32>
    %14 = tpu.matmul %12, %13, %cst_12 {dimension_numbers = #tpu.dot_dimension_numbers<[1], [0], [0], [1], [0, 0, 1, 1], [], []>} : vector<8x192xbf16>, vector<192x64xbf16>, vector<8x64xf32> -> vector<8x64xf32>
    %c0_13 = arith.constant 0 : index
    %c0_14 = arith.constant 0 : index
    %15 = vector.load %arg4[%c0_13, %c0_14] : memref<1x64xf32, #tpu.memory_space<vmem>>, vector<1x64xf32>
    %16 = vector.broadcast %15 : vector<1x64xf32> to vector<8x64xf32>
    %17 = arith.addf %14, %16 : vector<8x64xf32>
    %cst_15 = arith.constant 5.000000e-01 : f32
    %18 = vector.broadcast %cst_15 : f32 to vector<8x64xf32>
    %19 = arith.mulf %18, %17 : vector<8x64xf32>
    %cst_16 = arith.constant 0.707106769 : f32
    %20 = vector.broadcast %cst_16 : f32 to vector<8x64xf32>
    %21 = arith.mulf %17, %20 : vector<8x64xf32>
    %22 = math.absf %21 : vector<8x64xf32>
    %cst_17 = arith.constant 0.327591091 : f32
    %23 = vector.broadcast %cst_17 : f32 to vector<8x64xf32>
    %24 = arith.mulf %23, %22 : vector<8x64xf32>
    %cst_18 = arith.constant 1.000000e+00 : f32
    %25 = vector.broadcast %cst_18 : f32 to vector<8x64xf32>
    %26 = arith.addf %25, %24 : vector<8x64xf32>
    %27 = tpu.reciprocal %26 {approx = true} : vector<8x64xf32> -> vector<8x64xf32>
    %cst_19 = arith.constant 1.06140542 : f32
    %28 = vector.broadcast %cst_19 : f32 to vector<8x64xf32>
    %29 = arith.mulf %28, %27 : vector<8x64xf32>
    %cst_20 = arith.constant 1.45315206 : f32
    %30 = vector.broadcast %cst_20 : f32 to vector<8x64xf32>
    %31 = arith.subf %29, %30 : vector<8x64xf32>
    %32 = arith.mulf %31, %27 : vector<8x64xf32>
    %cst_21 = arith.constant 1.42141378 : f32
    %33 = vector.broadcast %cst_21 : f32 to vector<8x64xf32>
    %34 = arith.addf %32, %33 : vector<8x64xf32>
    %35 = arith.mulf %34, %27 : vector<8x64xf32>
    %cst_22 = arith.constant 0.284496725 : f32
    %36 = vector.broadcast %cst_22 : f32 to vector<8x64xf32>
    %37 = arith.subf %35, %36 : vector<8x64xf32>
    %38 = arith.mulf %37, %27 : vector<8x64xf32>
    %cst_23 = arith.constant 0.254829586 : f32
    %39 = vector.broadcast %cst_23 : f32 to vector<8x64xf32>
    %40 = arith.addf %38, %39 : vector<8x64xf32>
    %41 = arith.mulf %40, %27 : vector<8x64xf32>
    %cst_24 = arith.constant 0.000000e+00 : f32
    %42 = vector.broadcast %cst_24 : f32 to vector<8x64xf32>
    %43 = arith.subf %42, %22 : vector<8x64xf32>
    %44 = arith.mulf %43, %22 : vector<8x64xf32>
    %45 = math.exp %44 : vector<8x64xf32>
    %46 = arith.mulf %41, %45 : vector<8x64xf32>
    %cst_25 = arith.constant 1.000000e+00 : f32
    %47 = vector.broadcast %cst_25 : f32 to vector<8x64xf32>
    %48 = arith.subf %47, %46 : vector<8x64xf32>
    %cst_26 = arith.constant 0.000000e+00 : f32
    %49 = vector.broadcast %cst_26 : f32 to vector<8x64xf32>
    %50 = arith.cmpf olt, %21, %49 : vector<8x64xf32>
    %cst_27 = arith.constant 0.000000e+00 : f32
    %51 = vector.broadcast %cst_27 : f32 to vector<8x64xf32>
    %52 = arith.subf %51, %48 : vector<8x64xf32>
    %53 = arith.select %50, %52, %48 : vector<8x64xi1>, vector<8x64xf32>
    %cst_28 = arith.constant 1.000000e+00 : f32
    %54 = vector.broadcast %cst_28 : f32 to vector<8x64xf32>
    %55 = arith.addf %54, %53 : vector<8x64xf32>
    %56 = arith.mulf %19, %55 : vector<8x64xf32>
    %57 = arith.truncf %56 : vector<8x64xf32> to vector<8x64xbf16>
    %c0_29 = arith.constant 0 : index
    %c0_30 = arith.constant 0 : index
    %58 = vector.load %arg5[%c0_29, %c0_30] : memref<12x8xbf16, #tpu.memory_space<vmem>>, vector<12x8xbf16>
    %cst_31 = arith.constant dense<0.000000e+00> : vector<12x64xf32>
    %59 = tpu.matmul %58, %57, %cst_31 {dimension_numbers = #tpu.dot_dimension_numbers<[1], [0], [0], [1], [0, 0, 1, 1], [], []>} : vector<12x8xbf16>, vector<8x64xbf16>, vector<12x64xf32> -> vector<12x64xf32>
    %60 = arith.truncf %59 : vector<12x64xf32> to vector<12x64xbf16>
    %61 = vector.extract_strided_slice %60 {offsets = [0, 0], sizes = [4, 64], strides = [1, 1]} : vector<12x64xbf16> to vector<4x64xbf16>
    %c0_32 = arith.constant 0 : index
    %c0_33 = arith.constant 0 : index
    %62 = vector.load %arg20[%c0_32, %c0_33] : memref<16x192xbf16, #tpu.memory_space<vmem>>, vector<4x64xbf16>
    tpu.vector_store %arg20[%c0_32, %c0_33], %61 {strides = array<i32>} : memref<16x192xbf16, #tpu.memory_space<vmem>>, vector<4x64xbf16>,
    %63 = vector.extract_strided_slice %60 {offsets = [4, 0], sizes = [4, 64], strides = [1, 1]} : vector<12x64xbf16> to vector<4x64xbf16>
    %c0_34 = arith.constant 0 : index
    %c64_35 = arith.constant 64 : index
    %64 = vector.load %arg20[%c0_34, %c64_35] : memref<16x192xbf16, #tpu.memory_space<vmem>>, vector<4x64xbf16>
    tpu.vector_store %arg20[%c0_34, %c64_35], %63 {strides = array<i32>} : memref<16x192xbf16, #tpu.memory_space<vmem>>, vector<4x64xbf16>,
    %65 = vector.extract_strided_slice %60 {offsets = [8, 0], sizes = [4, 64], strides = [1, 1]} : vector<12x64xbf16> to vector<4x64xbf16>
    %c0_36 = arith.constant 0 : index
    %c128_37 = arith.constant 128 : index
    %66 = vector.load %arg20[%c0_36, %c128_37] : memref<16x192xbf16, #tpu.memory_space<vmem>>, vector<4x64xbf16>
    tpu.vector_store %arg20[%c0_36, %c128_37], %65 {strides = array<i32>} : memref<16x192xbf16, #tpu.memory_space<vmem>>, vector<4x64xbf16>,
    %c0_38 = arith.constant 0 : index
    %c0_39 = arith.constant 0 : index
    %67 = vector.load %arg20[%c0_38, %c0_39] : memref<16x192xbf16, #tpu.memory_space<vmem>>, vector<4x192xbf16>
    %c0_40 = arith.constant 0 : index
    %c0_41 = arith.constant 0 : index
    %68 = vector.load %arg6[%c0_40, %c0_41] : memref<192x64xbf16, #tpu.memory_space<vmem>>, vector<192x64xbf16>
    %cst_42 = arith.constant dense<0.000000e+00> : vector<4x64xf32>
    %69 = tpu.matmul %67, %68, %cst_42 {dimension_numbers = #tpu.dot_dimension_numbers<[1], [0], [0], [1], [0, 0, 1, 1], [], []>} : vector<4x192xbf16>, vector<192x64xbf16>, vector<4x64xf32> -> vector<4x64xf32>
    %c0_43 = arith.constant 0 : index
    %c0_44 = arith.constant 0 : index
    %70 = vector.load %arg7[%c0_43, %c0_44] : memref<1x64xf32, #tpu.memory_space<vmem>>, vector<1x64xf32>
    %71 = vector.broadcast %70 : vector<1x64xf32> to vector<4x64xf32>
    %72 = arith.addf %69, %71 : vector<4x64xf32>
    %cst_45 = arith.constant 5.000000e-01 : f32
    %73 = vector.broadcast %cst_45 : f32 to vector<4x64xf32>
    %74 = arith.mulf %73, %72 : vector<4x64xf32>
    %cst_46 = arith.constant 0.707106769 : f32
    %75 = vector.broadcast %cst_46 : f32 to vector<4x64xf32>
    %76 = arith.mulf %72, %75 : vector<4x64xf32>
    %77 = math.absf %76 : vector<4x64xf32>
    %cst_47 = arith.constant 0.327591091 : f32
    %78 = vector.broadcast %cst_47 : f32 to vector<4x64xf32>
    %79 = arith.mulf %78, %77 : vector<4x64xf32>
    %cst_48 = arith.constant 1.000000e+00 : f32
    %80 = vector.broadcast %cst_48 : f32 to vector<4x64xf32>
    %81 = arith.addf %80, %79 : vector<4x64xf32>
    %82 = tpu.reciprocal %81 {approx = true} : vector<4x64xf32> -> vector<4x64xf32>
    %cst_49 = arith.constant 1.06140542 : f32
    %83 = vector.broadcast %cst_49 : f32 to vector<4x64xf32>
    %84 = arith.mulf %83, %82 : vector<4x64xf32>
    %cst_50 = arith.constant 1.45315206 : f32
    %85 = vector.broadcast %cst_50 : f32 to vector<4x64xf32>
    %86 = arith.subf %84, %85 : vector<4x64xf32>
    %87 = arith.mulf %86, %82 : vector<4x64xf32>
    %cst_51 = arith.constant 1.42141378 : f32
    %88 = vector.broadcast %cst_51 : f32 to vector<4x64xf32>
    %89 = arith.addf %87, %88 : vector<4x64xf32>
    %90 = arith.mulf %89, %82 : vector<4x64xf32>
    %cst_52 = arith.constant 0.284496725 : f32
    %91 = vector.broadcast %cst_52 : f32 to vector<4x64xf32>
    %92 = arith.subf %90, %91 : vector<4x64xf32>
    %93 = arith.mulf %92, %82 : vector<4x64xf32>
    %cst_53 = arith.constant 0.254829586 : f32
    %94 = vector.broadcast %cst_53 : f32 to vector<4x64xf32>
    %95 = arith.addf %93, %94 : vector<4x64xf32>
    %96 = arith.mulf %95, %82 : vector<4x64xf32>
    %cst_54 = arith.constant 0.000000e+00 : f32
    %97 = vector.broadcast %cst_54 : f32 to vector<4x64xf32>
    %98 = arith.subf %97, %77 : vector<4x64xf32>
    %99 = arith.mulf %98, %77 : vector<4x64xf32>
    %100 = math.exp %99 : vector<4x64xf32>
    %101 = arith.mulf %96, %100 : vector<4x64xf32>
    %cst_55 = arith.constant 1.000000e+00 : f32
    %102 = vector.broadcast %cst_55 : f32 to vector<4x64xf32>
    %103 = arith.subf %102, %101 : vector<4x64xf32>
    %cst_56 = arith.constant 0.000000e+00 : f32
    %104 = vector.broadcast %cst_56 : f32 to vector<4x64xf32>
    %105 = arith.cmpf olt, %76, %104 : vector<4x64xf32>
    %cst_57 = arith.constant 0.000000e+00 : f32
    %106 = vector.broadcast %cst_57 : f32 to vector<4x64xf32>
    %107 = arith.subf %106, %103 : vector<4x64xf32>
    %108 = arith.select %105, %107, %103 : vector<4x64xi1>, vector<4x64xf32>
    %cst_58 = arith.constant 1.000000e+00 : f32
    %109 = vector.broadcast %cst_58 : f32 to vector<4x64xf32>
    %110 = arith.addf %109, %108 : vector<4x64xf32>
    %111 = arith.mulf %74, %110 : vector<4x64xf32>
    %112 = vector.extract_strided_slice %111 {offsets = [0, 0], sizes = [1, 64], strides = [1, 1]} : vector<4x64xf32> to vector<1x64xf32>
    %c0_59 = arith.constant 0 : index
    %c0_60 = arith.constant 0 : index
    %113 = vector.load %arg21[%c0_59, %c0_60] : memref<8x256xf32, #tpu.memory_space<vmem>>, vector<1x64xf32>
    tpu.vector_store %arg21[%c0_59, %c0_60], %112 {strides = array<i32>} : memref<8x256xf32, #tpu.memory_space<vmem>>, vector<1x64xf32>,
    %114 = vector.extract_strided_slice %111 {offsets = [1, 0], sizes = [1, 64], strides = [1, 1]} : vector<4x64xf32> to vector<1x64xf32>
    %c0_61 = arith.constant 0 : index
    %c64_62 = arith.constant 64 : index
    %115 = vector.load %arg21[%c0_61, %c64_62] : memref<8x256xf32, #tpu.memory_space<vmem>>, vector<1x64xf32>
    tpu.vector_store %arg21[%c0_61, %c64_62], %114 {strides = array<i32>} : memref<8x256xf32, #tpu.memory_space<vmem>>, vector<1x64xf32>,
    %116 = vector.extract_strided_slice %111 {offsets = [2, 0], sizes = [1, 64], strides = [1, 1]} : vector<4x64xf32> to vector<1x64xf32>
    %c0_63 = arith.constant 0 : index
    %c128_64 = arith.constant 128 : index
    %117 = vector.load %arg21[%c0_63, %c128_64] : memref<8x256xf32, #tpu.memory_space<vmem>>, vector<1x64xf32>
    tpu.vector_store %arg21[%c0_63, %c128_64], %116 {strides = array<i32>} : memref<8x256xf32, #tpu.memory_space<vmem>>, vector<1x64xf32>,
    %118 = vector.extract_strided_slice %111 {offsets = [3, 0], sizes = [1, 64], strides = [1, 1]} : vector<4x64xf32> to vector<1x64xf32>
    %c0_65 = arith.constant 0 : index
    %c192 = arith.constant 192 : index
    %119 = vector.load %arg21[%c0_65, %c192] : memref<8x256xf32, #tpu.memory_space<vmem>>, vector<1x64xf32>
    tpu.vector_store %arg21[%c0_65, %c192], %118 {strides = array<i32>} : memref<8x256xf32, #tpu.memory_space<vmem>>, vector<1x64xf32>,
    %c0_66 = arith.constant 0 : index
    %c0_67 = arith.constant 0 : index
    %120 = vector.load %arg21[%c0_66, %c0_67] : memref<8x256xf32, #tpu.memory_space<vmem>>, vector<1x256xf32>
    %121 = arith.truncf %120 : vector<1x256xf32> to vector<1x256xbf16>
    %c0_68 = arith.constant 0 : index
    %c0_69 = arith.constant 0 : index
    %122 = vector.load %arg8[%c0_68, %c0_69] : memref<256x128xbf16, #tpu.memory_space<vmem>>, vector<256x128xbf16>
    %cst_70 = arith.constant dense<0.000000e+00> : vector<1x128xf32>
    %123 = tpu.matmul %121, %122, %cst_70 {dimension_numbers = #tpu.dot_dimension_numbers<[1], [0], [0], [1], [0, 0, 1, 1], [], []>} : vector<1x256xbf16>, vector<256x128xbf16>, vector<1x128xf32> -> vector<1x128xf32>
    %c0_71 = arith.constant 0 : index
    %c0_72 = arith.constant 0 : index
    %124 = vector.load %arg9[%c0_71, %c0_72] : memref<1x128xf32, #tpu.memory_space<vmem>>, vector<1x128xf32>
    %125 = arith.addf %123, %124 : vector<1x128xf32>
    %c0_73 = arith.constant 0 : index
    %c0_74 = arith.constant 0 : index
    %c0_75 = arith.constant 0 : index
    %126 = vector.load %arg19[%c0_73, %c0_74, %c0_75] : memref<1x1x128xf32, #tpu.memory_space<vmem>>, vector<1x1x128xf32>
    %127 = vector.shape_cast %126 : vector<1x1x128xf32> to vector<1x128xf32>
    %128 = vector.shape_cast %125 : vector<1x128xf32> to vector<1x1x128xf32>
    tpu.vector_store %arg19[%c0_73, %c0_74, %c0_75], %128 {strides = array<i32>} : memref<1x1x128xf32, #tpu.memory_space<vmem>>, vector<1x1x128xf32>,
    %129 = arith.truncf %125 : vector<1x128xf32> to vector<1x128xbf16>
    %c0_76 = arith.constant 0 : index
    %c0_77 = arith.constant 0 : index
    %130 = vector.load %arg10[%c0_76, %c0_77] : memref<128x256xbf16, #tpu.memory_space<vmem>>, vector<128x256xbf16>
    %cst_78 = arith.constant dense<0.000000e+00> : vector<1x256xf32>
    %131 = tpu.matmul %129, %130, %cst_78 {dimension_numbers = #tpu.dot_dimension_numbers<[1], [0], [0], [1], [0, 0, 1, 1], [], []>} : vector<1x128xbf16>, vector<128x256xbf16>, vector<1x256xf32> -> vector<1x256xf32>
    %132 = vector.extract_strided_slice %131 {offsets = [0, 0], sizes = [1, 64], strides = [1, 1]} : vector<1x256xf32> to vector<1x64xf32>
    %c0_79 = arith.constant 0 : index
    %c0_80 = arith.constant 0 : index
    %133 = vector.load %arg22[%c0_79, %c0_80] : memref<8x64xf32, #tpu.memory_space<vmem>>, vector<1x64xf32>
    tpu.vector_store %arg22[%c0_79, %c0_80], %132 {strides = array<i32>} : memref<8x64xf32, #tpu.memory_space<vmem>>, vector<1x64xf32>,
    %134 = vector.extract_strided_slice %131 {offsets = [0, 64], sizes = [1, 64], strides = [1, 1]} : vector<1x256xf32> to vector<1x64xf32>
    %c1 = arith.constant 1 : index
    %c0_81 = arith.constant 0 : index
    %135 = vector.load %arg22[%c1, %c0_81] : memref<8x64xf32, #tpu.memory_space<vmem>>, vector<1x64xf32>
    tpu.vector_store %arg22[%c1, %c0_81], %134 {strides = array<i32>} : memref<8x64xf32, #tpu.memory_space<vmem>>, vector<1x64xf32>,
    %136 = vector.extract_strided_slice %131 {offsets = [0, 128], sizes = [1, 64], strides = [1, 1]} : vector<1x256xf32> to vector<1x64xf32>
    %c2 = arith.constant 2 : index
    %c0_82 = arith.constant 0 : index
    %137 = vector.load %arg22[%c2, %c0_82] : memref<8x64xf32, #tpu.memory_space<vmem>>, vector<1x64xf32>
    tpu.vector_store %arg22[%c2, %c0_82], %136 {strides = array<i32>} : memref<8x64xf32, #tpu.memory_space<vmem>>, vector<1x64xf32>,
    %138 = vector.extract_strided_slice %131 {offsets = [0, 192], sizes = [1, 64], strides = [1, 1]} : vector<1x256xf32> to vector<1x64xf32>
    %c3 = arith.constant 3 : index
    %c0_83 = arith.constant 0 : index
    %139 = vector.load %arg22[%c3, %c0_83] : memref<8x64xf32, #tpu.memory_space<vmem>>, vector<1x64xf32>
    tpu.vector_store %arg22[%c3, %c0_83], %138 {strides = array<i32>} : memref<8x64xf32, #tpu.memory_space<vmem>>, vector<1x64xf32>,
    %c0_84 = arith.constant 0 : index
    %c0_85 = arith.constant 0 : index
    %140 = vector.load %arg22[%c0_84, %c0_85] : memref<8x64xf32, #tpu.memory_space<vmem>>, vector<4x64xf32>
    %c0_86 = arith.constant 0 : index
    %c0_87 = arith.constant 0 : index
    %141 = vector.load %arg11[%c0_86, %c0_87] : memref<4x64xf32, #tpu.memory_space<vmem>>, vector<4x64xf32>
    %142 = arith.addf %140, %141 : vector<4x64xf32>
    %143 = arith.truncf %142 : vector<4x64xf32> to vector<4x64xbf16>
    %c0_88 = arith.constant 0 : index
    %c0_89 = arith.constant 0 : index
    %144 = vector.load %arg12[%c0_88, %c0_89] : memref<24x4xbf16, #tpu.memory_space<vmem>>, vector<24x4xbf16>
    %cst_90 = arith.constant dense<0.000000e+00> : vector<24x64xf32>
    %145 = tpu.matmul %144, %143, %cst_90 {dimension_numbers = #tpu.dot_dimension_numbers<[1], [0], [0], [1], [0, 0, 1, 1], [], []>} : vector<24x4xbf16>, vector<4x64xbf16>, vector<24x64xf32> -> vector<24x64xf32>
    %146 = arith.truncf %145 : vector<24x64xf32> to vector<24x64xbf16>
    %147 = vector.extract_strided_slice %146 {offsets = [0, 0], sizes = [8, 64], strides = [1, 1]} : vector<24x64xbf16> to vector<8x64xbf16>
    %c0_91 = arith.constant 0 : index
    %c0_92 = arith.constant 0 : index
    %148 = vector.load %arg20[%c0_91, %c0_92] : memref<16x192xbf16, #tpu.memory_space<vmem>>, vector<8x64xbf16>
    tpu.vector_store %arg20[%c0_91, %c0_92], %147 {strides = array<i32>} : memref<16x192xbf16, #tpu.memory_space<vmem>>, vector<8x64xbf16>,
    %149 = vector.extract_strided_slice %146 {offsets = [8, 0], sizes = [8, 64], strides = [1, 1]} : vector<24x64xbf16> to vector<8x64xbf16>
    %c0_93 = arith.constant 0 : index
    %c64_94 = arith.constant 64 : index
    %150 = vector.load %arg20[%c0_93, %c64_94] : memref<16x192xbf16, #tpu.memory_space<vmem>>, vector<8x64xbf16>
    tpu.vector_store %arg20[%c0_93, %c64_94], %149 {strides = array<i32>} : memref<16x192xbf16, #tpu.memory_space<vmem>>, vector<8x64xbf16>,
    %151 = vector.extract_strided_slice %146 {offsets = [16, 0], sizes = [8, 64], strides = [1, 1]} : vector<24x64xbf16> to vector<8x64xbf16>
    %c0_95 = arith.constant 0 : index
    %c128_96 = arith.constant 128 : index
    %152 = vector.load %arg20[%c0_95, %c128_96] : memref<16x192xbf16, #tpu.memory_space<vmem>>, vector<8x64xbf16>
    tpu.vector_store %arg20[%c0_95, %c128_96], %151 {strides = array<i32>} : memref<16x192xbf16, #tpu.memory_space<vmem>>, vector<8x64xbf16>,
    %c0_97 = arith.constant 0 : index
    %c0_98 = arith.constant 0 : index
    %153 = vector.load %arg20[%c0_97, %c0_98] : memref<16x192xbf16, #tpu.memory_space<vmem>>, vector<8x192xbf16>
    %c0_99 = arith.constant 0 : index
    %c0_100 = arith.constant 0 : index
    %154 = vector.load %arg13[%c0_99, %c0_100] : memref<192x64xbf16, #tpu.memory_space<vmem>>, vector<192x64xbf16>
    %cst_101 = arith.constant dense<0.000000e+00> : vector<8x64xf32>
    %155 = tpu.matmul %153, %154, %cst_101 {dimension_numbers = #tpu.dot_dimension_numbers<[1], [0], [0], [1], [0, 0, 1, 1], [], []>} : vector<8x192xbf16>, vector<192x64xbf16>, vector<8x64xf32> -> vector<8x64xf32>
    %c0_102 = arith.constant 0 : index
    %c0_103 = arith.constant 0 : index
    %156 = vector.load %arg14[%c0_102, %c0_103] : memref<1x64xf32, #tpu.memory_space<vmem>>, vector<1x64xf32>
    %157 = vector.broadcast %156 : vector<1x64xf32> to vector<8x64xf32>
    %158 = arith.addf %155, %157 : vector<8x64xf32>
    %cst_104 = arith.constant 5.000000e-01 : f32
    %159 = vector.broadcast %cst_104 : f32 to vector<8x64xf32>
    %160 = arith.mulf %159, %158 : vector<8x64xf32>
    %cst_105 = arith.constant 0.707106769 : f32
    %161 = vector.broadcast %cst_105 : f32 to vector<8x64xf32>
    %162 = arith.mulf %158, %161 : vector<8x64xf32>
    %163 = math.absf %162 : vector<8x64xf32>
    %cst_106 = arith.constant 0.327591091 : f32
    %164 = vector.broadcast %cst_106 : f32 to vector<8x64xf32>
    %165 = arith.mulf %164, %163 : vector<8x64xf32>
    %cst_107 = arith.constant 1.000000e+00 : f32
    %166 = vector.broadcast %cst_107 : f32 to vector<8x64xf32>
    %167 = arith.addf %166, %165 : vector<8x64xf32>
    %168 = tpu.reciprocal %167 {approx = true} : vector<8x64xf32> -> vector<8x64xf32>
    %cst_108 = arith.constant 1.06140542 : f32
    %169 = vector.broadcast %cst_108 : f32 to vector<8x64xf32>
    %170 = arith.mulf %169, %168 : vector<8x64xf32>
    %cst_109 = arith.constant 1.45315206 : f32
    %171 = vector.broadcast %cst_109 : f32 to vector<8x64xf32>
    %172 = arith.subf %170, %171 : vector<8x64xf32>
    %173 = arith.mulf %172, %168 : vector<8x64xf32>
    %cst_110 = arith.constant 1.42141378 : f32
    %174 = vector.broadcast %cst_110 : f32 to vector<8x64xf32>
    %175 = arith.addf %173, %174 : vector<8x64xf32>
    %176 = arith.mulf %175, %168 : vector<8x64xf32>
    %cst_111 = arith.constant 0.284496725 : f32
    %177 = vector.broadcast %cst_111 : f32 to vector<8x64xf32>
    %178 = arith.subf %176, %177 : vector<8x64xf32>
    %179 = arith.mulf %178, %168 : vector<8x64xf32>
    %cst_112 = arith.constant 0.254829586 : f32
    %180 = vector.broadcast %cst_112 : f32 to vector<8x64xf32>
    %181 = arith.addf %179, %180 : vector<8x64xf32>
    %182 = arith.mulf %181, %168 : vector<8x64xf32>
    %cst_113 = arith.constant 0.000000e+00 : f32
    %183 = vector.broadcast %cst_113 : f32 to vector<8x64xf32>
    %184 = arith.subf %183, %163 : vector<8x64xf32>
    %185 = arith.mulf %184, %163 : vector<8x64xf32>
    %186 = math.exp %185 : vector<8x64xf32>
    %187 = arith.mulf %182, %186 : vector<8x64xf32>
    %cst_114 = arith.constant 1.000000e+00 : f32
    %188 = vector.broadcast %cst_114 : f32 to vector<8x64xf32>
    %189 = arith.subf %188, %187 : vector<8x64xf32>
    %cst_115 = arith.constant 0.000000e+00 : f32
    %190 = vector.broadcast %cst_115 : f32 to vector<8x64xf32>
    %191 = arith.cmpf olt, %162, %190 : vector<8x64xf32>
    %cst_116 = arith.constant 0.000000e+00 : f32
    %192 = vector.broadcast %cst_116 : f32 to vector<8x64xf32>
    %193 = arith.subf %192, %189 : vector<8x64xf32>
    %194 = arith.select %191, %193, %189 : vector<8x64xi1>, vector<8x64xf32>
    %cst_117 = arith.constant 1.000000e+00 : f32
    %195 = vector.broadcast %cst_117 : f32 to vector<8x64xf32>
    %196 = arith.addf %195, %194 : vector<8x64xf32>
    %197 = arith.mulf %160, %196 : vector<8x64xf32>
    %198 = arith.truncf %197 : vector<8x64xf32> to vector<8x64xbf16>
    %c0_118 = arith.constant 0 : index
    %c0_119 = arith.constant 0 : index
    %199 = vector.load %arg15[%c0_118, %c0_119] : memref<48x8xbf16, #tpu.memory_space<vmem>>, vector<48x8xbf16>
    %cst_120 = arith.constant dense<0.000000e+00> : vector<48x64xf32>
    %200 = tpu.matmul %199, %198, %cst_120 {dimension_numbers = #tpu.dot_dimension_numbers<[1], [0], [0], [1], [0, 0, 1, 1], [], []>} : vector<48x8xbf16>, vector<8x64xbf16>, vector<48x64xf32> -> vector<48x64xf32>
    %201 = arith.truncf %200 : vector<48x64xf32> to vector<48x64xbf16>
    %202 = vector.extract_strided_slice %201 {offsets = [0, 0], sizes = [16, 64], strides = [1, 1]} : vector<48x64xbf16> to vector<16x64xbf16>
    %c0_121 = arith.constant 0 : index
    %c0_122 = arith.constant 0 : index
    %203 = vector.load %arg20[%c0_121, %c0_122] : memref<16x192xbf16, #tpu.memory_space<vmem>>, vector<16x64xbf16>
    tpu.vector_store %arg20[%c0_121, %c0_122], %202 {strides = array<i32>} : memref<16x192xbf16, #tpu.memory_space<vmem>>, vector<16x64xbf16>,
    %204 = vector.extract_strided_slice %201 {offsets = [16, 0], sizes = [16, 64], strides = [1, 1]} : vector<48x64xbf16> to vector<16x64xbf16>
    %c0_123 = arith.constant 0 : index
    %c64_124 = arith.constant 64 : index
    %205 = vector.load %arg20[%c0_123, %c64_124] : memref<16x192xbf16, #tpu.memory_space<vmem>>, vector<16x64xbf16>
    tpu.vector_store %arg20[%c0_123, %c64_124], %204 {strides = array<i32>} : memref<16x192xbf16, #tpu.memory_space<vmem>>, vector<16x64xbf16>,
    %206 = vector.extract_strided_slice %201 {offsets = [32, 0], sizes = [16, 64], strides = [1, 1]} : vector<48x64xbf16> to vector<16x64xbf16>
    %c0_125 = arith.constant 0 : index
    %c128_126 = arith.constant 128 : index
    %207 = vector.load %arg20[%c0_125, %c128_126] : memref<16x192xbf16, #tpu.memory_space<vmem>>, vector<16x64xbf16>
    tpu.vector_store %arg20[%c0_125, %c128_126], %206 {strides = array<i32>} : memref<16x192xbf16, #tpu.memory_space<vmem>>, vector<16x64xbf16>,
    %c0_127 = arith.constant 0 : index
    %c0_128 = arith.constant 0 : index
    %208 = vector.load %arg20[%c0_127, %c0_128] : memref<16x192xbf16, #tpu.memory_space<vmem>>, vector<16x192xbf16>
    %c0_129 = arith.constant 0 : index
    %c0_130 = arith.constant 0 : index
    %209 = vector.load %arg16[%c0_129, %c0_130] : memref<192x128xbf16, #tpu.memory_space<vmem>>, vector<192x128xbf16>
    %cst_131 = arith.constant dense<0.000000e+00> : vector<16x128xf32>
    %210 = tpu.matmul %208, %209, %cst_131 {dimension_numbers = #tpu.dot_dimension_numbers<[1], [0], [0], [1], [0, 0, 1, 1], [], []>} : vector<16x192xbf16>, vector<192x128xbf16>, vector<16x128xf32> -> vector<16x128xf32>
    %c0_132 = arith.constant 0 : index
    %c0_133 = arith.constant 0 : index
    %211 = vector.load %arg17[%c0_132, %c0_133] : memref<1x128xf32, #tpu.memory_space<vmem>>, vector<1x128xf32>
    %212 = vector.broadcast %211 : vector<1x128xf32> to vector<16x128xf32>
    %213 = arith.addf %210, %212 : vector<16x128xf32>
    %c0_134 = arith.constant 0 : index
    %c0_135 = arith.constant 0 : index
    %c0_136 = arith.constant 0 : index
    %214 = vector.load %arg18[%c0_134, %c0_135, %c0_136] : memref<1x16x128xf32, #tpu.memory_space<vmem>>, vector<1x16x128xf32>
    %215 = vector.shape_cast %214 : vector<1x16x128xf32> to vector<16x128xf32>
    %216 = vector.shape_cast %213 : vector<16x128xf32> to vector<1x16x128xf32>
    tpu.vector_store %arg18[%c0_134, %c0_135, %c0_136], %216 {strides = array<i32>} : memref<1x16x128xf32, #tpu.memory_space<vmem>>, vector<1x16x128xf32>,
    return
  }
  func.func @transform_0(%arg0: i32) -> (i32, i32, i32) {
    %c0_i32 = arith.constant 0 : i32
    %c0_i32_0 = arith.constant 0 : i32
    %c0_i32_1 = arith.constant 0 : i32
    return %arg0, %c0_i32, %c0_i32_0 : i32, i32, i32
  }
  func.func @transform_1(%arg0: i32) -> (i32, i32) {
    %c0_i32 = arith.constant 0 : i32
    %c0_i32_0 = arith.constant 0 : i32
    %c0_i32_1 = arith.constant 0 : i32
    return %c0_i32, %c0_i32_0 : i32, i32
  }
  func.func @transform_2(%arg0: i32) -> (i32, i32) {
    %c0_i32 = arith.constant 0 : i32
    %c0_i32_0 = arith.constant 0 : i32
    %c0_i32_1 = arith.constant 0 : i32
    return %c0_i32, %c0_i32_0 : i32, i32
  }
  func.func @transform_3(%arg0: i32) -> (i32, i32) {
    %c0_i32 = arith.constant 0 : i32
    %c0_i32_0 = arith.constant 0 : i32
    %c0_i32_1 = arith.constant 0 : i32
    return %c0_i32, %c0_i32_0 : i32, i32
  }
  func.func @transform_4(%arg0: i32) -> (i32, i32) {
    %c0_i32 = arith.constant 0 : i32
    %c0_i32_0 = arith.constant 0 : i32
    %c0_i32_1 = arith.constant 0 : i32
    return %c0_i32, %c0_i32_0 : i32, i32
  }
  func.func @transform_5(%arg0: i32) -> (i32, i32) {
    %c0_i32 = arith.constant 0 : i32
    %c0_i32_0 = arith.constant 0 : i32
    %c0_i32_1 = arith.constant 0 : i32
    return %c0_i32, %c0_i32_0 : i32, i32
  }
  func.func @transform_6(%arg0: i32) -> (i32, i32) {
    %c0_i32 = arith.constant 0 : i32
    %c0_i32_0 = arith.constant 0 : i32
    %c0_i32_1 = arith.constant 0 : i32
    return %c0_i32, %c0_i32_0 : i32, i32
  }
  func.func @transform_7(%arg0: i32) -> (i32, i32) {
    %c0_i32 = arith.constant 0 : i32
    %c0_i32_0 = arith.constant 0 : i32
    %c0_i32_1 = arith.constant 0 : i32
    return %c0_i32, %c0_i32_0 : i32, i32
  }
  func.func @transform_8(%arg0: i32) -> (i32, i32) {
    %c0_i32 = arith.constant 0 : i32
    %c0_i32_0 = arith.constant 0 : i32
    %c0_i32_1 = arith.constant 0 : i32
    return %c0_i32, %c0_i32_0 : i32, i32
  }
  func.func @transform_9(%arg0: i32) -> (i32, i32) {
    %c0_i32 = arith.constant 0 : i32
    %c0_i32_0 = arith.constant 0 : i32
    %c0_i32_1 = arith.constant 0 : i32
    return %c0_i32, %c0_i32_0 : i32, i32
  }
  func.func @transform_10(%arg0: i32) -> (i32, i32) {
    %c0_i32 = arith.constant 0 : i32
    %c0_i32_0 = arith.constant 0 : i32
    %c0_i32_1 = arith.constant 0 : i32
    return %c0_i32, %c0_i32_0 : i32, i32
  }
  func.func @transform_11(%arg0: i32) -> (i32, i32) {
    %c0_i32 = arith.constant 0 : i32
    %c0_i32_0 = arith.constant 0 : i32
    %c0_i32_1 = arith.constant 0 : i32
    return %c0_i32, %c0_i32_0 : i32, i32
  }
  func.func @transform_12(%arg0: i32) -> (i32, i32) {
    %c0_i32 = arith.constant 0 : i32
    %c0_i32_0 = arith.constant 0 : i32
    %c0_i32_1 = arith.constant 0 : i32
    return %c0_i32, %c0_i32_0 : i32, i32
  }
  func.func @transform_13(%arg0: i32) -> (i32, i32) {
    %c0_i32 = arith.constant 0 : i32
    %c0_i32_0 = arith.constant 0 : i32
    %c0_i32_1 = arith.constant 0 : i32
    return %c0_i32, %c0_i32_0 : i32, i32
  }
  func.func @transform_14(%arg0: i32) -> (i32, i32) {
    %c0_i32 = arith.constant 0 : i32
    %c0_i32_0 = arith.constant 0 : i32
    %c0_i32_1 = arith.constant 0 : i32
    return %c0_i32, %c0_i32_0 : i32, i32
  }
  func.func @transform_15(%arg0: i32) -> (i32, i32) {
    %c0_i32 = arith.constant 0 : i32
    %c0_i32_0 = arith.constant 0 : i32
    %c0_i32_1 = arith.constant 0 : i32
    return %c0_i32, %c0_i32_0 : i32, i32
  }
  func.func @transform_16(%arg0: i32) -> (i32, i32) {
    %c0_i32 = arith.constant 0 : i32
    %c0_i32_0 = arith.constant 0 : i32
    %c0_i32_1 = arith.constant 0 : i32
    return %c0_i32, %c0_i32_0 : i32, i32
  }
  func.func @transform_17(%arg0: i32) -> (i32, i32, i32) {
    %c0_i32 = arith.constant 0 : i32
    %c0_i32_0 = arith.constant 0 : i32
    %c0_i32_1 = arith.constant 0 : i32
    return %arg0, %c0_i32, %c0_i32_0 : i32, i32, i32
  }
  func.func @transform_18(%arg0: i32) -> (i32, i32, i32) {
    %c0_i32 = arith.constant 0 : i32
    %c0_i32_0 = arith.constant 0 : i32
    %c0_i32_1 = arith.constant 0 : i32
    return %arg0, %c0_i32, %c0_i32_0 : i32, i32, i32
  }
}

</mosaic_0001>

<bundles_post_ra>
// kernel: maxvit_ae_forward.1
= control target key start
LH: loop header
LB: loop body
LE: loop exit
PB: predicated region body
PF: predicated region fallthrough
CT: control target
= control target key end

     0   :  { %s3042_s0 = inlined_call_operand.vmem [shape: f32[2,16,64], index: 0, kind: input, shape index: {}]   ;;  %s3043_s1 = inlined_call_operand.vmem [shape: bf16[24,16], index: 1, kind: input, shape index: {}]   ;;  %s3044_s2 = inlined_call_operand.vmem [shape: bf16[192,64], index: 2, kind: input, shape index: {}]   ;;  %s3045_s3 = inlined_call_operand.vmem [shape: f32[1,64], index: 3, kind: input, shape index: {}]   ;;  %s3046_s4 = inlined_call_operand.vmem [shape: bf16[12,8], index: 4, kind: input, shape index: {}]   ;;  %s3047_s5 = inlined_call_operand.vmem [shape: bf16[192,64], index: 5, kind: input, shape index: {}]   ;;  %s3048_s6 = inlined_call_operand.vmem [shape: f32[1,64], index: 6, kind: input, shape index: {}]   ;;  %s3049_s7 = inlined_call_operand.vmem [shape: bf16[256,128], index: 7, kind: input, shape index: {}]   ;;  %s3050_s8 = inlined_call_operand.vmem [shape: f32[1,128], index: 8, kind: input, shape index: {}]   ;;  %s3051_s9 = inlined_call_operand.vmem [shape: bf16[128,256], index: 9, kind: input, shape index: {}]   ;;  %s3052_s10 = inlined_call_operand.vmem [shape: f32[4,64], index: 10, kind: input, shape index: {}]   ;;  %s3053_s11 = inlined_call_operand.vmem [shape: bf16[24,4], index: 11, kind: input, shape index: {}]   ;;  %s3054_s12 = inlined_call_operand.vmem [shape: bf16[192,64], index: 12, kind: input, shape index: {}]   ;;  %s3055_s13 = inlined_call_operand.vmem [shape: f32[1,64], index: 13, kind: input, shape index: {}]   ;;  %s3056_s14 = inlined_call_operand.vmem [shape: bf16[48,8], index: 14, kind: input, shape index: {}]   ;;  %s3057_s15 = inlined_call_operand.vmem [shape: bf16[192,128], index: 15, kind: input, shape index: {}]   ;;  %s3058_s16 = inlined_call_operand.vmem [shape: f32[1,128], index: 16, kind: input, shape index: {}]   ;;  %s3059_s17 = inlined_call_operand.vmem [shape: f32[2,16,128], index: 17, kind: output, shape index: {0}]   ;;  %s3060_s18 = inlined_call_operand.hbm [shape: f32[2,1,128], index: 18, kind: output, shape index: {1}]  }
   0x1   :  { %3072 = sst [smem:[#allocation14_spill]] %s3042_s0 }
   0x2   :  { %3073 = sst [smem:[#allocation15_spill]] %s3043_s1 }
   0x3   :  { %3074 = sst [smem:[#allocation16_spill]] %s3044_s2 }
   0x4   :  { %3075 = sst [smem:[#allocation17_spill]] %s3045_s3 }
   0x5   :  { %3076 = sst [smem:[#allocation18_spill]] %s3046_s4 }
   0x6   :  { %3077 = sst [smem:[#allocation19_spill]] %s3059_s17 }
   0x7   :  { %24 = vsyncpa [#allocation6], 0 }
   0x8   :  { %26 = vsyncpa [#allocation6 + $0x1], 0  ;;  %s2555_s27 = smov 0   ;;  %s2557_s28 = smov 0  }
   0x9   :  { %s2559_s29 = smov 0   ;;  %s2561_s30 = smov 0  }
   0xa LB: > { %3078 = sst [smem:[#allocation8_spill]] %s2441_s27  ;;  %s2576_s0 = sadd.s32 4294967295, %s2453_s30   ;;  %s2453_s30 = sphi %s2561_s30, %s3098_s30   ;;  %s2449_s29 = sphi %s2559_s29, %s3100_s29   ;;  %s2445_s28 = sphi %s2557_s28, %s3102_s28   ;;  %s2441_s27 = sphi %s2555_s27, %s3101_s27  }
   0xb   : > { %3079 = sst [smem:[#allocation9_spill]] %s2449_s29  ;;  %s2050_s19 = sadd.s32 4294967294, %s2453_s30  }
   0xc   : > { %3080 = sst [smem:[#allocation10_spill]] %s2453_s30  ;;  %s2580_s1 = sadd.s32 1, %s2453_s30  }
   0xd   : > { %3081 = sst [smem:[#allocation11_spill]] %s2580_s1  ;;  %s427_s20 = sadd.s32 1, %s2449_s29 }
   0xe   : > { %s424_s21 = ssub.s32 %s2453_s30, %s2580_s1  ;;  %p437_p0 = scmp.ne.s32.totalorder %s2449_s29, %s2445_s28 }
   0xf   : > { %p425_p1 = scmp.eq.s32.totalorder %s424_s21, 0  ;;  %p438_p2 = scmp.eq.s32.totalorder %s2576_s0, 1 }
  0x10   : > { %p443_p3 = scmp.ne.s32.totalorder %s2445_s28, %s2441_s27  ;;  %p444_p4 = scmp.eq.s32.totalorder %s2050_s19, 1 }
  0x11   : > { %s2591_s22 = scalar_select %p425_p1, %s2449_s29, %s427_s20  }
  0x12   : > { %p2593_p5 = por %p438_p2, %p437_p0  ;;  %p2597_p6 = por %p444_p4, %p443_p3 }
  0x13   : > { %3082 = sst [smem:[#allocation12_spill]] %s2591_s22  ;;  %p2053_p7 = scmp.ge.s32.totalorder %s2453_s30, 1 }
  0x14   : > { %s3084_s23 = scalar_select %p2597_p6, 1, 0 }
  0x15   : > { %p518_p8 = scmp.lt.s32.totalorder %s2453_s30, 3 }
  0x16   : > { %3085 = sst [smem:[#allocation13_spill]] %s3084_s23 }
  0x17   : > { %p519_p9 = pnand %p2053_p7, %p518_p8 }
  0x18   : > { %p576_p10 = scmp.lt.s32.totalorder (!%p519_p9), %s2576_s0, 1  ;;  %s3086_s26 = sld [smem:[#allocation15_spill]] (!%p519_p9)  ;;  %vm601_vm0 = vcmask (!%p519_p9), 130048   ;;  %v2455_v6 = vmov (!%p519_p9), 0   ;;  %vm658_vm1 = vcmask (!%p519_p9), 519168   ;;  %vm773_vm2 = vcmask (!%p519_p9), 523264  }
  0x19   : > { %522 = sbr.rel (%p519_p9) target bundleno = 3127 (0xc37), region = 88  ;;  %s3087_s29 = sld [smem:[#allocation14_spill]] (!%p519_p9)  ;;  %vm665_vm3 = vcmask (!%p519_p9), 1043968   ;;  %v2457_v28 = vmov (!%p519_p9), 0.0   ;;  %vm2458_vm4 = vmmov (!%p519_p9), 0   ;;  %vm855_vm6 = vcmask (!%p519_p9), 1043456  }
  0x1a   : > { %s3088_s30 = sld [smem:[#allocation16_spill]] (!%p519_p9)  ;;  %s3070_s23 = smov (!%p519_p9), 64   ;;  %2213 = vmatprep.subr.bf16.mxu0 (!%p519_p9), %v2457_v28  ;;  %2215 = vmatprep.mubr.msk.bf16.mxu0 (!%p519_p9), %vm2458_vm4, %v2457_v28  ;;  %vm851_vm7 = vcmask (!%p519_p9), 64512   ;;  %v2298_v63 = vld [vmem:[%s3047_s5] sm:$0xff] (!%p519_p9)   ;;  %vm901_vm8 = vcmask (!%p519_p9), 517120   ;;  %vm908_vm9 = vcmask (!%p519_p9), 1041920  }
  0x1b   : > { %s3090_s3 = sld [smem:[#allocation17_spill]] (!%p519_p9)  ;;  %s3091_s4 = sld [smem:[#allocation18_spill]] (!%p519_p9)  ;;  %vm1087_vm11 = vcmask (!%p519_p9), 516096   ;;  %vm1094_vm12 = vcmask (!%p519_p9), 1040896   ;;  %vm1453_vm13 = vcmask (!%p519_p9), 31744   ;;  %vm1460_vm14 = vcmask (!%p519_p9), 1041408  }
  0x1c   : > { %s2459_s21 = smov (!%p519_p9), [#allocation5]  }
  0x1d   : > { %s2395_s24 = sshll.u32 (!%p519_p9), %s2459_s21, 4  ;;  %s2396_s24 = int_to_ptr.vmem [resolvable:$false] %s2395_s24 }
  0x1e   : > { %v2283_v0 = vld [vmem:[%s3086_s26] sm:$0xff] (!%p519_p9)   ;;  %v2284_v4 = vld [vmem:[%s3086_s26 + $0x8] ss:$0 sps:$4 sm:$0xff] (!%p519_p9)  }
  0x1f   : > { %2209 = vmatprep.mubr.msk.bf16.mxu1 (!%p519_p9), %vm601_vm0, %v2283_v0  ;;  %v2299_v0 = vld [vmem:[%s3047_s5 + $0x8] sm:$0xff] (!%p519_p9)  }
  0x20   : > { %s2608_s19 = scalar_select %p576_p10, %s2576_s0, 1  ;;  %v2285_v5 = vld [vmem:[%s3088_s30] sm:$0xff]  }
  0x21   : > { %s3089_s17 = smov %s3088_s30  ;;  %v2062_v29 = vld [vmem:[%s3090_s3] ss:$0 sm:$0xff]  ;;  %s3092_s30 = smov 64  }
  0x22   : > { %s3069_s20 = sshll.u32 %s2608_s19, 4  ;;  %v2286_v7 = vld [vmem:[%s3089_s17 + $0x8] sm:$0xff]   ;;  %v2287_v8 = vld [vmem:[%s3089_s17 + $0x10] sm:$0xff]   ;;  %v2288_v9 = vld [vmem:[%s3089_s17 + $0x18] sm:$0xff]  }
  0x23   : > { %s580_s1 = scalar_lea.vmem %s3087_s29, %s3069_s20  ;;  %v2289_v10 = vld [vmem:[%s3089_s17 + $0x20] sm:$0xff]   ;;  %v2290_v11 = vld [vmem:[%s3089_s17 + $0x28] sm:$0xff]   ;;  %v2291_v12 = vld [vmem:[%s3089_s17 + $0x30] sm:$0xff]   ;;  %s574_s20 = sand.u32 1, %s2445_s28  }
  0x24   : > { %v587_v1 = vld [vmem:[%s580_s1] sm:$0xff]  ;;  %v588_v2 = vld [vmem:[%s580_s1 + $0x8] sm:$0xff]  ;;  %v2292_v13 = vld [vmem:[%s3089_s17 + $0x38] sm:$0xff]   ;;  %s2844_s22 = scalar_lea.vmem [#allocation5], %s574_s20  ;;  %s1955_s3 = scalar_lea.sflag [#allocation6], %s574_s20 }
  0x25   : > { %v589_v3 = vpack.c.bf16 %v588_v2, %v587_v1  ;;  %v2293_v14 = vld [vmem:[%s3089_s17 + $0x40] sm:$0xff]   ;;  %v2294_v15 = vld [vmem:[%s3089_s17 + $0x48] sm:$0xff]   ;;  %v2295_v16 = vld [vmem:[%s3089_s17 + $0x50] sm:$0xff]   ;;  %s1970_s25 = sshll.u32 %s2844_s22, 4  ;;  %s1971_s25 = int_to_ptr.vmem [resolvable:$true] %s1970_s25 }
  0x26   : > { %v2296_v17 = vld [vmem:[%s3089_s17 + $0x58] sm:$0xff]   ;;  %v2297_v62 = vld [vmem:[%s3091_s4] sm:$0x3f]   ;;  %v2300_v1 = vld [vmem:[%s3047_s5 + $0x10] sm:$0xff]   ;;  %s2391_s1 = scalar_lea.vmem %s1971_s25, 16  ;;  %s2397_s4 = scalar_lea.vmem %s2396_s24, 32 }
  0x27   : > { %2207 = vmatprep.subr.bf16.mxu1 %v589_v3  ;;  %v2301_v2 = vld [vmem:[%s3047_s5 + $0x18] sm:$0xff]   ;;  %p2392_p11 = scmp.ne.s32.totalorder %s1971_s25, %s2391_s1  ;;  %p2398_p0 = scmp.lt.s32.totalorder %s1971_s25, %s2396_s24 }
  0x28   : > { %2208 = vmatpush3.bf16.msra.mxu1 %v589_v3  ;;  %v2302_v3 = vld [vmem:[%s3047_s5 + $0x20] sm:$0xff]   ;;  %p2399_p1 = scmp.lt.s32.totalorder %s2397_s4, %s2391_s1 }
  0x29   : > { %777 = vmatprep.subr.bf16.mxu1 %v2455_v6  ;;  %p2393_p12 = pnand %p2392_p11, %p2593_p5 }
  0x2a   : > { %p2400_p2 = por %p2399_p1, %p2398_p0 }
  0x2b   : > { %2210 = vmatmul.mubr.msk.bf16.vlgmr.msra.gmra.mrb[0].mxu1 %vm601_vm0, %v2284_v4  ;;  %v2303_v4 = vld [vmem:[%s3047_s5 + $0x28] sm:$0xff]   ;;  %vm1795_vm0 = vcmask 1048064   ;;  %p2394_p13 = pneg %p2393_p12 }
  0x2c   : > { %778 = vmatpush1.bf16.msra.mxu1 %v2285_v5  ;;  %v2304_v5 = vld [vmem:[%s3047_s5 + $0x30] sm:$0xff]  }
  0x2d   : > { %779 = vmatprep.subr.bf16.mxu1 %v2455_v6  ;;  %p2401_p3 = pnand %p2400_p2, %p2394_p13 }
  0x30   : > { %780 = vmatpush1.bf16.msra.mxu1 %v2286_v7  ;;  %v2305_v7 = vld [vmem:[%s3047_s5 + $0x38] sm:$0xff]  }
  0x31   : > { %781 = vmatprep.subr.bf16.mxu1 %v2455_v6 }
  0x34   : > { %782 = vmatpush1.bf16.msra.mxu1 %v2287_v8  ;;  %v2306_v8 = vld [vmem:[%s3047_s5 + $0x40] sm:$0xff]  }
  0x35   : > { %783 = vmatprep.subr.bf16.mxu1 %v2455_v6 }
  0x38   : > { %784 = vmatpush1.bf16.msra.mxu1 %v2288_v9  ;;  %v2307_v9 = vld [vmem:[%s3047_s5 + $0x48] sm:$0xff]  }
  0x39   : > { %785 = vmatprep.subr.bf16.mxu1 %v2455_v6 }
  0x3c   : > { %786 = vmatpush1.bf16.msra.mxu1 %v2289_v10  ;;  %v2308_v10 = vld [vmem:[%s3047_s5 + $0x50] sm:$0xff]  }
  0x3d   : > { %787 = vmatprep.subr.bf16.mxu1 %v2455_v6 }
  0x40   : > { %788 = vmatpush1.bf16.msra.mxu1 %v2290_v11  ;;  %v2309_v11 = vld [vmem:[%s3047_s5 + $0x58] sm:$0xff]  }
  0x41   : > { %789 = vmatprep.subr.bf16.mxu1 %v2455_v6 }
  0x44   : > { %790 = vmatpush1.bf16.msra.mxu1 %v2291_v12 }
  0x45   : > { %791 = vmatprep.subr.bf16.mxu1 %v2455_v6 }
  0x48   : > { %792 = vmatpush1.bf16.msra.mxu1 %v2292_v13 }
  0x49   : > { %793 = vmatprep.subr.bf16.mxu1 %v2455_v6 }
  0x4c   : > { %794 = vmatpush1.bf16.msra.mxu1 %v2293_v14 }
  0x4d   : > { %795 = vmatprep.subr.bf16.mxu1 %v2455_v6 }
  0x50   : > { %796 = vmatpush1.bf16.msra.mxu1 %v2294_v15 }
  0x51   : > { %797 = vmatprep.subr.bf16.mxu1 %v2455_v6 }
  0x54   : > { %798 = vmatpush1.bf16.msra.mxu1 %v2295_v16 }
  0x55   : > { %799 = vmatprep.subr.bf16.mxu1 %v2455_v6 }
  0x58   : > { %800 = vmatpush1.bf16.msra.mxu1 %v2296_v17 }
  0xfe   : > { %v2211_v18 = vpop.f32.mrb[0].mxu1 }
  0xff   : > { %v657_v19 = vpack.c.bf16 %v2211_v18, %v2211_v18  ;;  %v642_v20 = vpop.f32.mrb[1].mxu1 }
 0x100   : > { %v2212_v21 = vpop.f32.mrb[2].mxu1 }
 0x101   : > { %667 = vst.msk [vmem:[#allocation2 + $0x8] sm:$0xf] %vm658_vm1, %v657_v19  ;;  %v645_v22 = vpop.f32.mrb[3].mxu1 }
 0x102   : > { %v656_v23 = vpack.c.bf16 %v645_v22, %v642_v20  ;;  %v2310_v22 = vld [vmem:[%s3049_s7 + $0x40] sm:$0xff]  }
 0x103   : > { %2178 = vmatprep.subr.bf16.mxu1 %v2310_v22 }
 0x104   : > { %659 = vst.msk [vmem:[#allocation2] sm:$0xf] %vm658_vm1, %v656_v23  ;;  %v661_v24 = vrot.slane %v656_v23, 4  ;;  %v2311_v23 = vld [vmem:[%s3049_s7] sm:$0xff]  }
 0x106   : > { %662 = vrot.lane.b32.xlu0 %v661_v24, %s3070_s23  ;;  %v2312_v24 = vld [vmem:[%s3049_s7 + $0x48] sm:$0xff]  }
 0x108   : > { %v669_v25 = vld [vmem:[#allocation2 + $0x8] sm:$0xf] }
 0x109   : > { %2075 = vmatprep.mubr.msk.bf16.mxu1 %vm773_vm2, %v669_v25  ;;  %v2313_v25 = vld [vmem:[%s3049_s7 + $0x8] sm:$0xff]  }
 0x178   : > { %v663_v26 = vpop.permute.xlu0 %662 }
 0x179   : > { %666 = vst.msk [vmem:[#allocation2] sm:$0xf] %vm665_vm3, %v663_v26  ;;  %v2314_v26 = vld [vmem:[%s3049_s7 + $0x50] sm:$0xff]  }
 0x180   : > { %v668_v27 = vld [vmem:[#allocation2] sm:$0xf] }
 0x181   : > { %810 = vmatmul.mubr.bf16.vlgmr.msra.gmra.mrb[4].mxu1 %v668_v27  ;;  %v2315_v27 = vld [vmem:[%s3049_s7 + $0x10] sm:$0xff]  }
 0x182   : > { %2179 = vmatpush3.bf16.msra.mxu1 %v2311_v23  ;;  %v1106_v23 = vlaneseq }
 0x183   : > { %2180 = vmatprep.subr.bf16.mxu1 %v2312_v24 }
 0x186   : > { %2181 = vmatpush3.bf16.msra.mxu1 %v2313_v25  ;;  %v1107_v25 = vshrl.u32 %v1106_v23, 7 }
 0x187   : > { %2182 = vmatprep.subr.bf16.mxu1 %v2314_v26 }
 0x188   : > { %v1108_v26 = vsub.s32 0, %v1107_v25 }
 0x18a   : > { %2183 = vmatpush3.bf16.msra.mxu1 %v2315_v27  ;;  %v1112_v27 = vsub.s32 1, %v1107_v25 }
 0x254   : > { %v811_v30 = vpop.f32.mrb[4].mxu1 }
 0x255   : > { %v812_v31 = vadd.f32 %v2062_v29, %v811_v30  ;;  %v813_v32 = vpop.f32.mrb[5].mxu1  ;;  %v2316_v29 = vld [vmem:[%s3049_s7 + $0x58] sm:$0xff]  }
 0x256   : > { %v814_v33 = vpop.f32.mrb[6].mxu1  ;;  %v2317_v30 = vld [vmem:[%s3049_s7 + $0x18] sm:$0xff]   ;;  %2184 = vmatprep.subr.bf16.mxu1 %v2316_v29 }
 0x257   : > { %v818_v34 = vmul.f32 0.70710677, %v812_v31  ;;  %v815_v35 = vpop.f32.mrb[7].mxu1  ;;  %v817_v57 = vmul.f32 0.5, %v812_v31  ;;  %2185 = vmatpush3.bf16.msra.mxu1 %v2317_v30  ;;  %v2080_v31 = vld [vmem:[%s3048_s6] ss:$0 sm:$0xff] }
 0x259   : > { %v819_v36 = vand.u32 2147483647, %v818_v34  ;;  %vm838_vm5 = vcmp.lt.f32.partialorder %v818_v34, 0.0 }
 0x25b   : > { %v820_v37 = vmul.f32 0.3275911, %v819_v36  ;;  %v832_v39 = vsub.f32 0.0, %v819_v36 }
 0x25d   : > { %v821_v38 = vadd.f32 1.0, %v820_v37  ;;  %v833_v41 = vmul.f32 %v832_v39, %v819_v36 }
 0x25f   : > { %2379 = vrcp.f32 %v821_v38  ;;  %v834_v44 = vmul.f32 1.442695, %v833_v41 }
 0x261   : > { %2381 = vpow2.f32 %v834_v44 }
 0x269   : > { %v2380_v40 = vpop.eup %2379 }
 0x26a   : > { %v823_v42 = vmul.f32 1.0614054, %v2380_v40 }
 0x26b   : > { %v2382_v52 = vpop.eup %2381 }
 0x26c   : > { %v2076_v43 = vadd.f32 -1.4531521, %v823_v42 }
 0x26e   : > { %v825_v45 = vmul.f32 %v2380_v40, %v2076_v43 }
 0x270   : > { %v826_v46 = vadd.f32 1.4214138, %v825_v45 }
 0x272   : > { %v827_v47 = vmul.f32 %v2380_v40, %v826_v46 }
 0x274   : > { %v2077_v48 = vadd.f32 -0.28449672, %v827_v47 }
 0x276   : > { %v829_v49 = vmul.f32 %v2380_v40, %v2077_v48 }
 0x278   : > { %v830_v50 = vadd.f32 0.2548296, %v829_v49 }
 0x27a   : > { %v831_v51 = vmul.f32 %v2380_v40, %v830_v50 }
 0x27c   : > { %v836_v53 = vmul.f32 %v2382_v52, %v831_v51 }
 0x27e   : > { %v837_v54 = vsub.f32 1.0, %v836_v53 }
 0x280   : > { %v839_v55 = vsub.f32 0.0, %v837_v54 }
 0x282   : > { %v840_v56 = vsel %vm838_vm5, %v839_v55, %v837_v54  ;;  %v2318_v55 = vld [vmem:[%s3049_s7 + $0x60] sm:$0xff]  }
 0x283   : > { %v841_v58 = vadd.f32 1.0, %v840_v56  ;;  %2186 = vmatprep.subr.bf16.mxu1 %v2318_v55 }
 0x285   : > { %v842_v59 = vmul.f32 %v841_v58, %v817_v57  ;;  %v2319_v57 = vld [vmem:[%s3049_s7 + $0x20] sm:$0xff]  }
 0x286   : > { %2187 = vmatpush3.bf16.msra.mxu1 %v2319_v57 }
 0x287   : > { %v843_v60 = vpack.c.bf16 %v842_v59, %v842_v59  ;;  %v2320_v59 = vld [vmem:[%s3049_s7 + $0x68] sm:$0xff]  }
 0x288   : > { %2188 = vmatprep.subr.bf16.mxu1 %v2320_v59  ;;  %v2352_v59 = vld [vmem:[%s3054_s12] sm:$0xff]  }
 0x289   : > { %v857_v61 = vsel %vm855_vm6, %v843_v60, 0 }
 0x28a   : > { %2214 = vmatpush3.bf16.msra.mxu0 %v857_v61  ;;  %v2321_v61 = vld [vmem:[%s3049_s7 + $0x28] sm:$0xff]  }
 0x28b   : > { %1021 = vmatprep.subr.bf16.mxu0 %v2455_v6  ;;  %2189 = vmatpush3.bf16.msra.mxu1 %v2321_v61  ;;  %v2354_v61 = vld [vmem:[%s3054_s12 + $0x10] sm:$0xff]  }
 0x28d   : > { %2216 = vmatmul.mubr.msk.bf16.vlgmr.msra.gmra.mrb[0].mxu0 %vm851_vm7, %v2297_v62  ;;  %v2322_v62 = vld [vmem:[%s3049_s7 + $0x70] sm:$0xff]  }
 0x28e   : > { %1022 = vmatpush1.bf16.msra.mxu0 %v2298_v63  ;;  %2190 = vmatprep.subr.bf16.mxu1 %v2322_v62  ;;  %v2355_v62 = vld [vmem:[%s3054_s12 + $0x18] sm:$0xff]  }
 0x28f   : > { %1023 = vmatprep.subr.bf16.mxu0 %v2455_v6 }
 0x292   : > { %1024 = vmatpush1.bf16.msra.mxu0 %v2299_v0  ;;  %v2323_v0 = vld [vmem:[%s3049_s7 + $0x30] sm:$0xff]  }
 0x293   : > { %1025 = vmatprep.subr.bf16.mxu0 %v2455_v6  ;;  %2191 = vmatpush3.bf16.msra.mxu1 %v2323_v0  ;;  %v2357_v0 = vld [vmem:[%s3054_s12 + $0x28] sm:$0xff]  }
 0x296   : > { %1026 = vmatpush1.bf16.msra.mxu0 %v2300_v1 }
 0x297   : > { %1027 = vmatprep.subr.bf16.mxu0 %v2455_v6 }
 0x29a   : > { %1028 = vmatpush1.bf16.msra.mxu0 %v2301_v2 }
 0x29b   : > { %1029 = vmatprep.subr.bf16.mxu0 %v2455_v6 }
 0x29e   : > { %1030 = vmatpush1.bf16.msra.mxu0 %v2302_v3  ;;  %v2324_v3 = vld [vmem:[%s3049_s7 + $0x78] sm:$0xff]  }
 0x29f   : > { %1031 = vmatprep.subr.bf16.mxu0 %v2455_v6  ;;  %2192 = vmatprep.subr.bf16.mxu1 %v2324_v3  ;;  %v2360_v3 = vld [vmem:[%s3054_s12 + $0x40] sm:$0xff]  }
 0x2a2   : > { %1032 = vmatpush1.bf16.msra.mxu0 %v2303_v4 }
 0x2a3   : > { %1033 = vmatprep.subr.bf16.mxu0 %v2455_v6 }
 0x2a6   : > { %1034 = vmatpush1.bf16.msra.mxu0 %v2304_v5  ;;  %v2325_v5 = vld [vmem:[%s3049_s7 + $0x38] sm:$0xff]  }
 0x2a7   : > { %1035 = vmatprep.subr.bf16.mxu0 %v2455_v6  ;;  %2193 = vmatpush3.bf16.msra.mxu1 %v2325_v5  ;;  %v2362_v5 = vld [vmem:[%s3054_s12 + $0x50] sm:$0xff]  }
 0x2aa   : > { %1036 = vmatpush1.bf16.msra.mxu0 %v2305_v7 }
 0x2ab   : > { %1037 = vmatprep.subr.bf16.mxu0 %v2455_v6 }
 0x2ae   : > { %1038 = vmatpush1.bf16.msra.mxu0 %v2306_v8 }
 0x2af   : > { %1039 = vmatprep.subr.bf16.mxu0 %v2455_v6 }
 0x2b2   : > { %1040 = vmatpush1.bf16.msra.mxu0 %v2307_v9 }
 0x2b3   : > { %1041 = vmatprep.subr.bf16.mxu0 %v2455_v6 }
 0x2b6   : > { %1042 = vmatpush1.bf16.msra.mxu0 %v2308_v10  ;;  %v2326_v10 = vld [vmem:[%s3051_s9] ss:$8 sps:$4 sm:$0xff]  }
 0x2b7   : > { %1043 = vmatprep.subr.bf16.mxu0 %v2455_v6 }
 0x2ba   : > { %1044 = vmatpush1.bf16.msra.mxu0 %v2309_v11  ;;  %v2328_v11 = vld [vmem:[%s3051_s9 + $0x4] ss:$8 sps:$4 sm:$0xff]  }
 0x2bb   : > { %1385 = vmatprep.subr.bf16.mxu0 %v2328_v11 }
 0x360   : > { %v893_v12 = vpop.f32.mrb[0].mxu0 }
 0x361   : > { %v2217_v13 = vpop.f32.mrb[1].mxu0 }
 0x362   : > { %v896_v14 = vpop.f32.mrb[2].mxu0  ;;  %v2329_v13 = vld [vmem:[%s3051_s9 + $0x10] ss:$8 sps:$4 sm:$0xff]  }
 0x363   : > { %v900_v15 = vpack.c.bf16 %v896_v14, %v893_v12  ;;  %v2218_v16 = vpop.f32.mrb[3].mxu0  ;;  %v2331_v12 = vld [vmem:[%s3051_s9 + $0x14] ss:$8 sps:$4 sm:$0xff]   ;;  %v2334_v14 = vld [vmem:[%s3051_s9 + $0x24] ss:$8 sps:$4 sm:$0xff]  }
 0x364   : > { %v2337_v16 = vld [vmem:[%s3051_s9 + $0x34] ss:$8 sps:$4 sm:$0xff]  }
 0x365   : > { %v910_v17 = vrot.slane %v900_v15, 4  ;;  %902 = vst.msk [vmem:[#allocation2] sm:$0x3] %vm901_vm8, %v900_v15  ;;  %v904_v18 = vrot.slane %v900_v15, 2  ;;  %v2332_v15 = vld [vmem:[%s3051_s9 + $0x20] ss:$8 sps:$4 sm:$0xff]  }
 0x367   : > { %912 = vst.msk [vmem:[#allocation2 + $0x8] sm:$0x3] %vm901_vm8, %v910_v17  ;;  %905 = vrot.lane.b32.xlu0 %v904_v18, %s3070_s23  ;;  %v2335_v17 = vld [vmem:[%s3051_s9 + $0x30] ss:$8 sps:$4 sm:$0xff]   ;;  %v2340_v18 = vld [vmem:[%s3051_s9 + $0x44] ss:$8 sps:$4 sm:$0xff]  }
 0x368   : > { %s2168_s23 = sshll.u32 %s2576_s0, 4 }
 0x369   : > { %s2996_s27 = scalar_lea.hbm %s3060_s18, %s2168_s23 }
 0x36e   : > { %v914_v19 = vld [vmem:[#allocation2 + $0x8] sm:$0x3] }
 0x36f   : > { %2093 = vmatprep.mubr.msk.bf16.mxu0 %vm773_vm2, %v914_v19  ;;  %v2338_v19 = vld [vmem:[%s3051_s9 + $0x40] ss:$8 sps:$4 sm:$0xff]  }
 0x3d9   : > { %v906_v20 = vpop.permute.xlu0 %905 }
 0x3da   : > { %909 = vst.msk [vmem:[#allocation2] sm:$0x3] %vm908_vm9, %v906_v20  ;;  %v2343_v20 = vld [vmem:[%s3051_s9 + $0x54] ss:$8 sps:$4 sm:$0xff]  }
 0x3e1   : > { %v913_v21 = vld [vmem:[#allocation2] sm:$0x3] }
 0x3e2   : > { %1054 = vmatmul.mubr.bf16.vlgmr.msra.gmra.mrb[4].mxu0 %v913_v21  ;;  %v2341_v21 = vld [vmem:[%s3051_s9 + $0x50] ss:$8 sps:$4 sm:$0xff]  }
 0x3e3   : > { %1417 = vmatprep.mubr.bf16.mxu0 %v2455_v6  ;;  %1386 = vmatpush1.bf16.msra.mxu0 %v2326_v10 }
 0x3e4   : > { %1387 = vmatprep.subr.bf16.mxu0 %v2331_v12 }
 0x3e7   : > { %1388 = vmatpush1.bf16.msra.mxu0 %v2329_v13 }
 0x3e8   : > { %1389 = vmatprep.subr.bf16.mxu0 %v2334_v14 }
 0x3eb   : > { %1390 = vmatpush1.bf16.msra.mxu0 %v2332_v15 }
 0x3ec   : > { %1391 = vmatprep.subr.bf16.mxu0 %v2337_v16 }
 0x3ef   : > { %1392 = vmatpush1.bf16.msra.mxu0 %v2335_v17 }
 0x3f0   : > { %1393 = vmatprep.subr.bf16.mxu0 %v2340_v18  ;;  %v2132_v18 = vld [vmem:[%s3055_s13] ss:$0 sm:$0xff] }
 0x3f3   : > { %1394 = vmatpush1.bf16.msra.mxu0 %v2338_v19 }
 0x3f4   : > { %1395 = vmatprep.subr.bf16.mxu0 %v2343_v20 }
 0x3f7   : > { %1396 = vmatpush1.bf16.msra.mxu0 %v2341_v21 }
 0x4b5   : > { %v1055_v32 = vpop.f32.mrb[4].mxu0 }
 0x4b6   : > { %v1056_v33 = vadd.f32 %v2080_v31, %v1055_v32  ;;  %v1057_v34 = vpop.f32.mrb[5].mxu0 }
 0x4b7   : > { %v1058_v35 = vpop.f32.mrb[6].mxu0  ;;  %v2346_v34 = vld [vmem:[%s3051_s9 + $0x64] ss:$8 sps:$4 sm:$0xff]  }
 0x4b8   : > { %v1062_v36 = vmul.f32 0.70710677, %v1056_v33  ;;  %v1059_v37 = vpop.f32.mrb[7].mxu0  ;;  %v1061_v1 = vmul.f32 0.5, %v1056_v33  ;;  %v2344_v35 = vld [vmem:[%s3051_s9 + $0x60] ss:$8 sps:$4 sm:$0xff]   ;;  %1397 = vmatprep.subr.bf16.mxu0 %v2346_v34 }
 0x4b9   : > { %1398 = vmatpush1.bf16.msra.mxu0 %v2344_v35  ;;  %v2347_v37 = vld [vmem:[%s3051_s9 + $0x70] ss:$8 sps:$4 sm:$0xff]  }
 0x4ba   : > { %v1063_v38 = vand.u32 2147483647, %v1062_v36  ;;  %vm1082_vm10 = vcmp.lt.f32.partialorder %v1062_v36, 0.0  ;;  %v2349_v36 = vld [vmem:[%s3051_s9 + $0x74] ss:$8 sps:$4 sm:$0xff]  }
 0x4bb   : > { %1399 = vmatprep.subr.bf16.mxu0 %v2349_v36 }
 0x4bc   : > { %v1064_v39 = vmul.f32 0.3275911, %v1063_v38  ;;  %v1076_v41 = vsub.f32 0.0, %v1063_v38 }
 0x4bd   : > { %1400 = vmatpush1.bf16.msra.mxu0 %v2347_v37 }
 0x4be   : > { %v1065_v40 = vadd.f32 1.0, %v1064_v39  ;;  %v1077_v43 = vmul.f32 %v1076_v41, %v1063_v38  ;;  %2225 = vmatprep.subr.bf16.mxu0 %v2457_v28  ;;  %v1150_v39 = vld [vmem:[%s3050_s8] sm:$0x1] }
 0x4c0   : > { %2383 = vrcp.f32 %v1065_v40  ;;  %v1078_v46 = vmul.f32 1.442695, %v1077_v43 }
 0x4c2   : > { %2385 = vpow2.f32 %v1078_v46 }
 0x4ca   : > { %v2384_v42 = vpop.eup %2383 }
 0x4cb   : > { %v1067_v44 = vmul.f32 1.0614054, %v2384_v42 }
 0x4cc   : > { %v2386_v54 = vpop.eup %2385 }
 0x4cd   : > { %v2094_v45 = vadd.f32 -1.4531521, %v1067_v44 }
 0x4cf   : > { %v1069_v47 = vmul.f32 %v2384_v42, %v2094_v45 }
 0x4d1   : > { %v1070_v48 = vadd.f32 1.4214138, %v1069_v47 }
 0x4d3   : > { %v1071_v49 = vmul.f32 %v2384_v42, %v1070_v48 }
 0x4d5   : > { %v2095_v50 = vadd.f32 -0.28449672, %v1071_v49  ;;  %v2350_v49 = vld [vmem:[%s3053_s11] sm:$0xff]  }
 0x4d7   : > { %v1073_v51 = vmul.f32 %v2384_v42, %v2095_v50 }
 0x4d9   : > { %v1074_v52 = vadd.f32 0.2548296, %v1073_v51 }
 0x4db   : > { %v1075_v53 = vmul.f32 %v2384_v42, %v1074_v52 }
 0x4dd   : > { %v1080_v56 = vmul.f32 %v2386_v54, %v1075_v53  ;;  %v1439_v53 = vld [vmem:[%s3052_s10] sm:$0xf] }
 0x4df   : > { %v1081_v58 = vsub.f32 1.0, %v1080_v56 }
 0x4e1   : > { %v1083_v60 = vsub.f32 0.0, %v1081_v58 }
 0x4e3   : > { %v1084_v63 = vsel %vm1082_vm10, %v1083_v60, %v1081_v58  ;;  %v2351_v58 = vld [vmem:[%s3053_s11 + $0x8] ss:$0 sps:$4 sm:$0xff]  }
 0x4e4   : > { %v1085_v2 = vadd.f32 1.0, %v1084_v63  ;;  %v2353_v60 = vld [vmem:[%s3054_s12 + $0x8] sm:$0xff]   ;;  %v2356_v63 = vld [vmem:[%s3054_s12 + $0x20] sm:$0xff]  }
 0x4e6   : > { %v1086_v4 = vmul.f32 %v1085_v2, %v1061_v1  ;;  %v2358_v1 = vld [vmem:[%s3054_s12 + $0x30] sm:$0xff]   ;;  %v2359_v2 = vld [vmem:[%s3054_s12 + $0x38] sm:$0xff]  }
 0x4e8   : > { %v1090_v7 = vrot.slane %v1086_v4, 1  ;;  %1088 = vst.msk [vmem:[#allocation3] sm:$0x1] %vm1087_vm11, %v1086_v4  ;;  %v1096_v8 = vrot.slane %v1086_v4, 2  ;;  %v1099_v9 = vrot.slane %v1086_v4, 3  ;;  %v2361_v4 = vld [vmem:[%s3054_s12 + $0x48] sm:$0xff]  }
 0x4ea   : > { %1091 = vrot.lane.b32.xlu1 %v1090_v7, %s3092_s30  ;;  %1098 = vst.msk [vmem:[#allocation3 + $0x8] sm:$0x1] %vm1087_vm11, %v1096_v8  ;;  %v2363_v7 = vld [vmem:[%s3054_s12 + $0x58] sm:$0xff]  }
 0x4ee   : > { %1100 = vrot.lane.b32.xlu1 %v1099_v9, %s3092_s30 }
 0x55c   : > { %v1092_v22 = vpop.permute.xlu1 %1091 }
 0x55d   : > { %1095 = vst.msk [vmem:[#allocation3] sm:$0x1] %vm1094_vm12, %v1092_v22 }
 0x560   : > { %v1101_v24 = vpop.permute.xlu1 %1100 }
 0x561   : > { %1103 = vst.msk [vmem:[#allocation3 + $0x8] sm:$0x1] %vm1094_vm12, %v1101_v24 }
 0x568   : > { %v1104_v29 = vld [vmem:[#allocation3] ss:$8 sm:$0x3] }
 0x569   : > { %v1109_v30 = vrot.slane %v1104_v29, %v1108_v26  ;;  %v1113_v31 = vrot.slane %v1104_v29, %v1112_v27 }
 0x56b   : > { %v1116_v32 = vpack.c.bf16 %v1109_v30, %v1109_v30  ;;  %v1117_v33 = vpack.c.bf16 %v1113_v31, %v1113_v31 }
 0x56d   : > { %1279 = vmatprep.mubr.bf16.mxu1 %v1117_v33 }
 0x56e   : > { %1280 = vmatmul.mubr.bf16.vlgmr.msra.gmra.mrb[8].mxu1 %v1116_v32 }
 0x56f   : > { %2221 = vmatprep.mubr.msk.bf16.mxu1 %vm1453_vm13, %v2350_v49 }
 0x641   : > { %v2194_v38 = vpop.f32.mrb[8].mxu1 }
 0x642   : > { %v2195_v40 = vpop.f32.mrb[9].mxu1 }
 0x643   : > { %v2196_v41 = vadd.f32 %v2195_v40, %v2194_v38  ;;  %v2197_v42 = vpop.f32.mrb[10].mxu1 }
 0x644   : > { %v2198_v43 = vpop.f32.mrb[11].mxu1 }
 0x645   : > { %v1282_v44 = vadd.f32 %v2196_v41, %v1150_v39 }
 0x647   : > { %v1288_v45 = vpack.c.bf16 %v1282_v44, %v1282_v44  ;;  %1287 = vst [vmem:[%s2844_s22] sm:$0x1] %v1282_v44 }
 0x649   : > { %1418 = vmatmul.mubr.bf16.vlgmr.msra.gmra.mrb[8].mxu0 %v1288_v45 }
 0x64a   : > { %2227 = vmatprep.mubr.msk.bf16.mxu0 %vm2458_vm4, %v2457_v28 }
 0x71c   : > { %v1419_v46 = vpop.f32.mrb[8].mxu0 }
 0x71d   : > { %1426 = vst.msk [vmem:[#allocation4] sm:$0x1] %vm1087_vm11, %v1419_v46  ;;  %1428 = vrot.lane.b32.xlu0 %v1419_v46, %s3092_s30  ;;  %v1421_v47 = vpop.f32.mrb[9].mxu0 }
 0x71e   : > { %1432 = vst.msk [vmem:[#allocation4 + $0x2] sm:$0x1] %vm1087_vm11, %v1421_v47  ;;  %1434 = vrot.lane.b32.xlu1 %v1421_v47, %s3092_s30  ;;  %v1423_v48 = vpop.f32.mrb[10].mxu0 }
 0x71f   : > { %v1424_v50 = vpop.f32.mrb[11].mxu0 }
 0x78f   : > { %v1429_v51 = vpop.permute.xlu0 %1428 }
 0x790   : > { %1431 = vst.msk [vmem:[#allocation4 + $0x1] sm:$0x1] %vm1087_vm11, %v1429_v51  ;;  %v1435_v52 = vpop.permute.xlu1 %1434 }
 0x791   : > { %1437 = vst.msk [vmem:[#allocation4 + $0x3] sm:$0x1] %vm1087_vm11, %v1435_v52  ;;  %v2364_v52 = vld [vmem:[%s3056_s14] sm:$0xff]  }
 0x798   : > { %v1438_v54 = vld [vmem:[#allocation4] sm:$0xf] }
 0x799   : > { %v1440_v55 = vadd.f32 %v1439_v53, %v1438_v54  ;;  %v2365_v53 = vld [vmem:[%s3056_s14 + $0x8] sm:$0xff]   ;;  %v2366_v54 = vld [vmem:[%s3056_s14 + $0x10] sm:$0xff]  }
 0x79b   : > { %v1441_v56 = vpack.c.bf16 %v1440_v55, %v1440_v55  ;;  %v2367_v55 = vld [vmem:[%s3057_s15] sm:$0xff]  }
 0x79d   : > { %2239 = vmatprep.subr.msk.bf16.mxu1 %vm1460_vm14, %v1441_v56  ;;  %v1462_v57 = vsel %vm1460_vm14, %v1441_v56, 0  ;;  %v2368_v56 = vld [vmem:[%s3057_s15 + $0x8] sm:$0xff]  }
 0x79e   : > { %2220 = vmatpush3.bf16.msra.mxu1 %v1462_v57  ;;  %v2370_v57 = vld [vmem:[%s3057_s15 + $0x18] sm:$0xff]  }
 0x79f   : > { %1630 = vmatprep.subr.bf16.mxu1 %v2455_v6 }
 0x7a1   : > { %2222 = vmatmul.mubr.msk.bf16.vlgmr.msra.gmra.mrb[12].mxu1 %vm1453_vm13, %v2351_v58  ;;  %v2371_v58 = vld [vmem:[%s3057_s15 + $0x20] sm:$0xff]  }
 0x7a2   : > { %1631 = vmatpush1.bf16.msra.mxu1 %v2352_v59  ;;  %v2372_v59 = vld [vmem:[%s3057_s15 + $0x28] sm:$0xff]  }
 0x7a3   : > { %1632 = vmatprep.subr.bf16.mxu1 %v2455_v6 }
 0x7a6   : > { %1633 = vmatpush1.bf16.msra.mxu1 %v2353_v60  ;;  %v2373_v60 = vld [vmem:[%s3057_s15 + $0x30] sm:$0xff]  }
 0x7a7   : > { %1634 = vmatprep.subr.bf16.mxu1 %v2455_v6 }
 0x7aa   : > { %1635 = vmatpush1.bf16.msra.mxu1 %v2354_v61  ;;  %v2374_v61 = vld [vmem:[%s3057_s15 + $0x38] sm:$0xff]  }
 0x7ab   : > { %1636 = vmatprep.subr.bf16.mxu1 %v2455_v6 }
 0x7ae   : > { %1637 = vmatpush1.bf16.msra.mxu1 %v2355_v62  ;;  %v2375_v62 = vld [vmem:[%s3057_s15 + $0x40] sm:$0xff]  }
 0x7af   : > { %1638 = vmatprep.subr.bf16.mxu1 %v2455_v6 }
 0x7b2   : > { %1639 = vmatpush1.bf16.msra.mxu1 %v2356_v63  ;;  %v2376_v63 = vld [vmem:[%s3057_s15 + $0x48] sm:$0xff]  }
 0x7b3   : > { %1640 = vmatprep.subr.bf16.mxu1 %v2455_v6 }
 0x7b6   : > { %1641 = vmatpush1.bf16.msra.mxu1 %v2357_v0  ;;  %v2377_v0 = vld [vmem:[%s3057_s15 + $0x50] sm:$0xff]  }
 0x7b7   : > { %1642 = vmatprep.subr.bf16.mxu1 %v2455_v6 }
 0x7ba   : > { %1643 = vmatpush1.bf16.msra.mxu1 %v2358_v1 }
 0x7bb   : > { %1644 = vmatprep.subr.bf16.mxu1 %v2455_v6 }
 0x7be   : > { %1645 = vmatpush1.bf16.msra.mxu1 %v2359_v2 }
 0x7bf   : > { %1646 = vmatprep.subr.bf16.mxu1 %v2455_v6 }
 0x7c2   : > { %1647 = vmatpush1.bf16.msra.mxu1 %v2360_v3  ;;  %v2378_v3 = vld [vmem:[%s3057_s15 + $0x58] sm:$0xff]  }
 0x7c3   : > { %1648 = vmatprep.subr.bf16.mxu1 %v2455_v6 }
 0x7c6   : > { %1649 = vmatpush1.bf16.msra.mxu1 %v2361_v4 }
 0x7c7   : > { %1650 = vmatprep.subr.bf16.mxu1 %v2455_v6 }
 0x7ca   : > { %1651 = vmatpush1.bf16.msra.mxu1 %v2362_v5 }
 0x7cb   : > { %1652 = vmatprep.subr.bf16.mxu1 %v2455_v6 }
 0x7ce   : > { %1653 = vmatpush1.bf16.msra.mxu1 %v2363_v7 }
 0x874   : > { %v2223_v8 = vpop.f32.mrb[12].mxu1 }
 0x875   : > { %v1513_v9 = vpack.c.bf16 %v2223_v8, %v2223_v8  ;;  %v1498_v10 = vpop.f32.mrb[13].mxu1 }
 0x876   : > { %v2224_v11 = vpop.f32.mrb[14].mxu1 }
 0x877   : > { %1521 = vst.msk [vmem:[#allocation2 + $0x8] sm:$0xf] %vm658_vm1, %v1513_v9  ;;  %v1501_v12 = vpop.f32.mrb[15].mxu1 }
 0x878   : > { %v1512_v13 = vpack.c.bf16 %v1501_v12, %v1498_v10 }
 0x87a   : > { %v1516_v14 = vrot.slane %v1512_v13, 4  ;;  %1514 = vst.msk [vmem:[#allocation2] sm:$0xf] %vm658_vm1, %v1512_v13 }
 0x87c   : > { %1517 = vrot.lane.b32.xlu0 %v1516_v14, %s3092_s30 }
 0x87e   : > { %v1523_v15 = vld [vmem:[#allocation2 + $0x8] sm:$0xf] }
 0x87f   : > { %2145 = vmatprep.mubr.msk.bf16.mxu1 %vm773_vm2, %v1523_v15 }
 0x8ee   : > { %v1518_v16 = vpop.permute.xlu0 %1517 }
 0x8ef   : > { %1520 = vst.msk [vmem:[#allocation2] sm:$0xf] %vm665_vm3, %v1518_v16 }
 0x8f6   : > { %v1522_v17 = vld [vmem:[#allocation2] sm:$0xf] }
 0x8f7   : > { %1663 = vmatmul.mubr.bf16.vlgmr.msra.gmra.mrb[16].mxu1 %v1522_v17 }
 0x9ca   : > { %v1664_v19 = vpop.f32.mrb[16].mxu1 }
 0x9cb   : > { %v1665_v20 = vadd.f32 %v2132_v18, %v1664_v19  ;;  %v1666_v21 = vpop.f32.mrb[17].mxu1 }
 0x9cc   : > { %v1667_v22 = vpop.f32.mrb[18].mxu1 }
 0x9cd   : > { %v1671_v23 = vmul.f32 0.70710677, %v1665_v20  ;;  %v1668_v24 = vpop.f32.mrb[19].mxu1  ;;  %v1670_v47 = vmul.f32 0.5, %v1665_v20 }
 0x9cf   : > { %v1672_v25 = vand.u32 2147483647, %v1671_v23  ;;  %vm1691_vm15 = vcmp.lt.f32.partialorder %v1671_v23, 0.0 }
 0x9d1   : > { %v1673_v26 = vmul.f32 0.3275911, %v1672_v25  ;;  %v1685_v29 = vsub.f32 0.0, %v1672_v25 }
 0x9d3   : > { %v1674_v27 = vadd.f32 1.0, %v1673_v26  ;;  %v1686_v31 = vmul.f32 %v1685_v29, %v1672_v25 }
 0x9d5   : > { %2387 = vrcp.f32 %v1674_v27  ;;  %v1687_v34 = vmul.f32 1.442695, %v1686_v31 }
 0x9d7   : > { %2389 = vpow2.f32 %v1687_v34 }
 0x9df   : > { %v2388_v30 = vpop.eup %2387 }
 0x9e0   : > { %v1676_v32 = vmul.f32 1.0614054, %v2388_v30 }
 0x9e1   : > { %v2390_v42 = vpop.eup %2389 }
 0x9e2   : > { %v2146_v33 = vadd.f32 -1.4531521, %v1676_v32 }
 0x9e4   : > { %v1678_v35 = vmul.f32 %v2388_v30, %v2146_v33 }
 0x9e6   : > { %v1679_v36 = vadd.f32 1.4214138, %v1678_v35 }
 0x9e8   : > { %v1680_v37 = vmul.f32 %v2388_v30, %v1679_v36 }
 0x9ea   : > { %v2147_v38 = vadd.f32 -0.28449672, %v1680_v37 }
 0x9ec   : > { %v1682_v39 = vmul.f32 %v2388_v30, %v2147_v38 }
 0x9ee   : > { %v1683_v40 = vadd.f32 0.2548296, %v1682_v39 }
 0x9f0   : > { %v1684_v41 = vmul.f32 %v2388_v30, %v1683_v40 }
 0x9f2   : > { %v1689_v43 = vmul.f32 %v2390_v42, %v1684_v41 }
 0x9f4   : > { %v1690_v44 = vsub.f32 1.0, %v1689_v43 }
 0x9f6   : > { %v1692_v45 = vsub.f32 0.0, %v1690_v44 }
 0x9f8   : > { %v1693_v46 = vsel %vm1691_vm15, %v1692_v45, %v1690_v44 }
 0x9f9   : > { %v1694_v48 = vadd.f32 1.0, %v1693_v46 }
 0x9fb   : > { %v1695_v49 = vmul.f32 %v1694_v48, %v1670_v47 }
 0x9fd   : > { %v1696_v50 = vpack.c.bf16 %v1695_v49, %v1695_v49 }
 0x9ff   : > { %v1728_v51 = vsel %vm855_vm6, %v1696_v50, 0 }
 0xa00   : > { %2226 = vmatpush3.bf16.msra.mxu0 %v1728_v51 }
 0xa01   : > { %1906 = vmatprep.subr.bf16.mxu0 %v2455_v6 }
 0xa03   : > { %2228 = vmatmul.mubr.msk.bf16.vlgmr.msra.gmra.mrb[12].mxu0 %vm851_vm7, %v2364_v52 }
 0xa04   : > { %2231 = vmatprep.mubr.msk.bf16.mxu0 %vm2458_vm4, %v2457_v28  ;;  %1907 = vmatpush1.bf16.msra.mxu0 %v2367_v55 }
 0xa05   : > { %1908 = vmatprep.subr.bf16.mxu0 %v2455_v6 }
 0xa08   : > { %1909 = vmatpush1.bf16.msra.mxu0 %v2368_v56 }
 0xa09   : > { %1910 = vmatprep.subr.bf16.mxu0 %v2455_v6 }
 0xa0b   : > { %2232 = vmatmul.mubr.msk.bf16.gmra.mrb[16].mxu0 %vm851_vm7, %v2365_v53 }
 0xa0c   : > { %2235 = vmatprep.mubr.msk.bf16.mxu0 %vm2458_vm4, %v2457_v28  ;;  %v2369_v28 = vld [vmem:[%s3057_s15 + $0x10] sm:$0xff]  }
 0xa0d   : > { %1911 = vmatpush1.bf16.msra.mxu0 %v2369_v28 }
 0xa0e   : > { %1912 = vmatprep.subr.bf16.mxu0 %v2455_v6 }
 0xa11   : > { %1913 = vmatpush1.bf16.msra.mxu0 %v2370_v57 }
 0xa12   : > { %1914 = vmatprep.subr.bf16.mxu0 %v2455_v6 }
 0xa13   : > { %2236 = vmatmul.mubr.msk.bf16.gmra.mrb[20].mxu0 %vm851_vm7, %v2366_v54 }
 0xa15   : > { %1915 = vmatpush1.bf16.msra.mxu0 %v2371_v58 }
 0xa16   : > { %1916 = vmatprep.subr.bf16.mxu0 %v2455_v6 }
 0xa19   : > { %1917 = vmatpush1.bf16.msra.mxu0 %v2372_v59 }
 0xa1a   : > { %1918 = vmatprep.subr.bf16.mxu0 %v2455_v6 }
 0xa1d   : > { %1919 = vmatpush1.bf16.msra.mxu0 %v2373_v60 }
 0xa1e   : > { %1920 = vmatprep.subr.bf16.mxu0 %v2455_v6 }
 0xa21   : > { %1921 = vmatpush1.bf16.msra.mxu0 %v2374_v61 }
 0xa22   : > { %1922 = vmatprep.subr.bf16.mxu0 %v2455_v6 }
 0xa25   : > { %1923 = vmatpush1.bf16.msra.mxu0 %v2375_v62 }
 0xa26   : > { %1924 = vmatprep.subr.bf16.mxu0 %v2455_v6 }
 0xa29   : > { %1925 = vmatpush1.bf16.msra.mxu0 %v2376_v63 }
 0xa2a   : > { %1926 = vmatprep.subr.bf16.mxu0 %v2455_v6 }
 0xa2d   : > { %1927 = vmatpush1.bf16.msra.mxu0 %v2377_v0 }
 0xa2e   : > { %1928 = vmatprep.subr.bf16.mxu0 %v2455_v6 }
 0xa31   : > { %1929 = vmatpush1.bf16.msra.mxu0 %v2378_v3 }
 0xad6   : > { %v1764_v1 = vpop.f32.mrb[12].mxu0 }
 0xad7   : > { %v2229_v2 = vpop.f32.mrb[13].mxu0 }
 0xad8   : > { %v1767_v4 = vpop.f32.mrb[14].mxu0 }
 0xad9   : > { %v1787_v5 = vpack.c.bf16 %v1767_v4, %v1764_v1  ;;  %v2230_v7 = vpop.f32.mrb[15].mxu0 }
 0xadb   : > { %1790 = vst.msk [vmem:[#allocation2] sm:$0xff] %vm773_vm2, %v1787_v5 }
 0xade   : > { %v1772_v8 = vpop.f32.mrb[16].mxu0 }
 0xadf   : > { %v2233_v9 = vpop.f32.mrb[17].mxu0 }
 0xae0   : > { %v1775_v10 = vpop.f32.mrb[18].mxu0 }
 0xae1   : > { %v1788_v11 = vpack.c.bf16 %v1775_v10, %v1772_v8  ;;  %v2234_v12 = vpop.f32.mrb[19].mxu0 }
 0xae3   : > { %1792 = vrot.lane.b32.xlu1 %v1788_v11, %s3092_s30 }
 0xae6   : > { %v1780_v13 = vpop.f32.mrb[20].mxu0 }
 0xae7   : > { %v2237_v14 = vpop.f32.mrb[21].mxu0 }
 0xae8   : > { %v1783_v15 = vpop.f32.mrb[22].mxu0 }
 0xae9   : > { %v1789_v16 = vpack.c.bf16 %v1783_v15, %v1780_v13  ;;  %v2238_v6 = vpop.f32.mrb[23].mxu0 }
 0xaeb   : > { %1797 = vst.msk [vmem:[#allocation2 + $0x8] sm:$0xff] %vm773_vm2, %v1789_v16 }
 0xaf2   : > { %v1799_v17 = vld [vmem:[#allocation2 + $0x8] sm:$0xff] }
 0xaf3   : > { %2167 = vmatprep.mubr.msk.bf16.mxu0 %vm773_vm2, %v1799_v17 }
 0xb55   : > { %v1793_v18 = vpop.permute.xlu1 %1792 }
 0xb56   : > { %1796 = vst.msk [vmem:[#allocation2] sm:$0xff] %vm1795_vm0, %v1793_v18 }
 0xb5d   : > { %v1798_v19 = vld [vmem:[#allocation2] sm:$0xff] }
 0xb5e   : > { %1939 = vmatmul.mubr.bf16.vlgmr.msra.gmra.mrb[24].mxu0 %v1798_v19 }
 0xb5f   : > { %2404 = shalt.err (!%p2401_p3)
}
 0xb60   : > { %s2405_s0 = scalar_lea.hbm %s2996_s27, 16  ;;  %s2409_s23 = scalar_lea.hbm %s3060_s18, 32 }
 0xb61   : > { %p2406_p4 = scmp.ne.s32.totalorder %s2996_s27, %s2405_s0  ;;  %p2410_p9 = scmp.lt.u32.totalorder %s2996_s27, %s3060_s18 }
 0xb62   : > { %p2411_p10 = scmp.lt.u32.totalorder %s2409_s23, %s2405_s0  ;;  %p2413_p12 = scmp.lt.u32.totalorder %s2405_s0, %s2996_s27 }
 0xb63   : > { %p2407_p7 = pnand %p2406_p4, %p2593_p5 }
 0xb64   : > { %p2412_p11 = por %p2411_p10, %p2410_p9 }
 0xb65   : > { %p2408_p8 = pneg %p2407_p7 }
 0xb66   : > { %p2414_p13 = por %p2413_p12, %p2412_p11 }
 0xb68   : > { %p2415_p0 = pnand %p2414_p13, %p2408_p8 }
 0xb6a   : > { %2418 = shalt.err (!%p2415_p0)
}
 0xb6b   : > { %2240 = dma.vmem_to_hbm [thread:$0]  (%p2593_p5), %s1971_s25, 16, %s2996_s27, %s1955_s3   ;;  %v2154_v20 = vld [vmem:[%s3058_s16] ss:$0 sm:$0xff] }
 0xb6c   : > { %s3093_s21 = sshll.u32 %s2608_s19, 4  ;;  %s3094_s22 = sld [smem:[#allocation19_spill]] }
 0xb72   : > { %s585_s30 = scalar_lea.vmem %s3094_s22, %s3093_s21 }
 0xc31   : > { %v1940_v21 = vpop.f32.mrb[24].mxu0 }
 0xc32   : > { %v1941_v22 = vadd.f32 %v2154_v20, %v1940_v21  ;;  %v1942_v23 = vpop.f32.mrb[25].mxu0 }
 0xc33   : > { %v1943_v24 = vpop.f32.mrb[26].mxu0 }
 0xc34   : > { %1947 = vst [vmem:[%s585_s30] sm:$0xff] %v1941_v22  ;;  %v1944_v25 = vadd.f32 %v2154_v20, %v1943_v24  ;;  %v1945_v26 = vpop.f32.mrb[27].mxu0 }
 0xc36   : > { %1948 = vst [vmem:[%s585_s30 + $0x8] sm:$0xff] %v1944_v25 }
 0xc37 PF: > { %s3095_s2 = sld [smem:[#allocation10_spill]]  ;;  %s3096_s25 = sld [smem:[#allocation8_spill]] }
 0xc3d   : > { %p2246_p5 = scmp.ge.s32.totalorder %s3095_s2, 2  ;;  %s1990_s3 = sand.u32 1, %s3096_s25  }
 0xc3e   : > { %s1991_s19 = scalar_lea.sflag [#allocation6], %s1990_s3 }
 0xc3f   : > { %p2243_p1 = pnand %p2246_p5, %p2597_p6 }
 0xc41   : > { %2436 = dma.done.wait (!%p2243_p1), %s1991_s19, 16  }
 0xc42   : > { %2438 = vsyncadd (!%p2243_p1), %s1991_s19, 4294967280  ;;  %s3098_s30 = sld [smem:[#allocation11_spill]]  ;;  %s3099_s0 = sld [smem:[#allocation9_spill]] }
 0xc43   : > { %s3100_s29 = sld [smem:[#allocation12_spill]]  ;;  %s3101_s27 = smov %s2445_s28 }
 0xc48   : > { %p29_p2 = scmp.ge.s32.totalorder %s3098_s30, 4   ;;  %s3102_s28 = smov %s3099_s0 }
 0xc4a   :  { %31 = sbr.rel (!%p29_p2) target bundleno = 10 (0xa), region = 135 }
 0xc51   :  { %1995 = vsyncpa [#allocation6], 1 }
 0xc52   :  { %1997 = vsyncpa [#allocation6 + $0x1], 1 }

</bundles_post_ra>
